<compile_context>
chip_gen: v6e
topology: v6e:2x2x1
jax: 0.10.0
libtpu: 0.0.40
codegen_flags: <defaults>
</compile_context>

<pallas_src>
import functools

import numpy as np
import jax
import jax.numpy as jnp
from jax import lax
from jax.experimental import pallas as pl
from jax.experimental.pallas import tpu as pltpu

# ----------------------------- config -----------------------------
VOCAB = 64
VOCAB_PAD = 128          # lane-dense logits (pad sliced off in glue)
HIDDEN = 32
N_LAYERS = 2
N_HEADS = 4
HEAD_DIM = HIDDEN // N_HEADS
INTERMEDIATE = 64
RMS_EPS = 1e-5
ROPE_THETA = 10000.0


# ----------------------------- fused Pallas kernel -----------------------------
def _fused_forward_kernel(h_ref, cos_ref, sin_ref, rot_ref, bias_ref,
                          ln1_ref, wqkv_ref, wo_ref, ln2_ref,
                          wgu_ref, wd_ref,
                          fnorm_ref, lmhead_ref, out_ref,
                          *, n_layers, n_heads, head_dim, eps, scale):
    S = h_ref.shape[1]
    D = h_ref.shape[2]
    F = wd_ref.shape[1]

    h = h_ref[0].astype(jnp.float32)      # (S, D) residual stream for this batch
    cos2 = cos_ref[...]                   # (S, 2D) head-tiled RoPE cos (q and k halves)
    sin2 = sin_ref[...]                   # (S, 2D) head-tiled RoPE sin
    rot2 = rot_ref[...]                   # (2D, 2D) block-diag rotate_half matrix
    bias = bias_ref[0]                    # (S, S) additive causal+padding mask

    def rmsnorm(x, w):
        var = jnp.mean(x * x, axis=-1, keepdims=True)
        return x * lax.rsqrt(var + eps) * w

    def rope_qk(x):
        # rotate_half(x) == x @ rot2  (block-diagonal per head, runs on the MXU)
        return x * cos2 + jnp.dot(x, rot2, preferred_element_type=jnp.float32) * sin2

    for li in range(n_layers):
        # ---------------- attention block ----------------
        xn = rmsnorm(h, ln1_ref[li])                                         # (S, D)
        qkv = jnp.dot(xn, wqkv_ref[li], preferred_element_type=jnp.float32)  # (S, 3D)
        qk = rope_qk(qkv[:, 0:2 * D])                                        # (S, 2D)
        q = qk[:, 0:D] * scale           # pre-scale q (cheaper than scaling (S,S))
        k = qk[:, D:2 * D]
        v = qkv[:, 2 * D:3 * D]

        wo_li = wo_ref[li]                                                   # (D, D)
        attn_delta = jnp.zeros((S, D), jnp.float32)
        for hd in range(n_heads):
            lo = hd * head_dim
            hi = lo + head_dim
            q_h = q[:, lo:hi]                                                # (S, Dh)
            k_h = k[:, lo:hi]
            v_h = v[:, lo:hi]
            # contract last dims directly (no k.T transpose)
            s = lax.dot_general(q_h, k_h, (((1,), (1,)), ((), ())),
                                preferred_element_type=jnp.float32)          # (S, S)
            s = s + bias
            m = jnp.max(s, axis=-1, keepdims=True)
            p = jnp.exp(s - m)
            p = p * pl.reciprocal(jnp.sum(p, axis=-1, keepdims=True), approx=True)
            o_h = jnp.dot(p, v_h, preferred_element_type=jnp.float32)        # (S, Dh)
            # fold head output straight into Wo row-slice (no head concat needed)
            attn_delta = attn_delta + jnp.dot(
                o_h, wo_li[lo:hi, :], preferred_element_type=jnp.float32)
        h = h + attn_delta

        # ---------------- SwiGLU MLP block (gate+up fused into one matmul) ----------------
        xn = rmsnorm(h, ln2_ref[li])
        gu = jnp.dot(xn, wgu_ref[li], preferred_element_type=jnp.float32)    # (S, 2F)
        g = gu[:, 0:F]
        u = gu[:, F:2 * F]
        h = h + jnp.dot((g * jax.nn.sigmoid(g)) * u, wd_ref[li],
                        preferred_element_type=jnp.float32)

    # ---------------- final norm + lm_head (lane-dense padded vocab) ----------------
    hf = rmsnorm(h, fnorm_ref[...])
    out_ref[0] = jnp.dot(hf, lmhead_ref[...],
                         preferred_element_type=jnp.float32).astype(out_ref.dtype)


def fused_forward(h, cos2, sin2, rot2, bias, params):
    """h: (B, S, D); returns padded logits (B, S, VOCAB_PAD)."""
    B, S, D = h.shape
    F = INTERMEDIATE
    L = N_LAYERS

    kernel = functools.partial(
        _fused_forward_kernel,
        n_layers=L, n_heads=N_HEADS, head_dim=HEAD_DIM,
        eps=RMS_EPS, scale=1.0 / float(HEAD_DIM) ** 0.5)

    def fixed(shape):      # same block on every grid step (fetched once, reused)
        n = len(shape)
        return pl.BlockSpec(shape, lambda b, _n=n: (0,) * _n)

    def batched(shape):    # one block per batch element
        n = len(shape)
        return pl.BlockSpec(shape, lambda b, _n=n: (b,) + (0,) * (_n - 1))

    return pl.pallas_call(
        kernel,
        out_shape=jax.ShapeDtypeStruct((B, S, VOCAB_PAD), jnp.float32),
        grid=(B,),
        in_specs=[
            batched((1, S, D)),            # h
            fixed((S, 2 * D)),             # cos (q,k tiled)
            fixed((S, 2 * D)),             # sin (q,k tiled)
            fixed((2 * D, 2 * D)),         # rot (rotate_half matrix, q,k block-diag)
            batched((1, S, S)),            # bias
            fixed((L, 1, D)),              # ln1 (stacked)
            fixed((L, D, 3 * D)),          # wqkv (fused q,k,v)
            fixed((L, D, D)),              # wo
            fixed((L, 1, D)),              # ln2
            fixed((L, D, 2 * F)),          # wgu (fused gate,up)
            fixed((L, F, D)),              # wd
            fixed((1, D)),                 # final_norm
            fixed((D, VOCAB_PAD)),         # lm_head (padded to 128 lanes)
        ],
        out_specs=batched((1, S, VOCAB_PAD)),
        compiler_params=pltpu.CompilerParams(
            dimension_semantics=("parallel",)),   # batch shards across v7x's 2 TCs
    )(h, cos2, sin2, rot2, bias,
      params["ln1"], params["wqkv"], params["wo"], params["ln2"],
      params["wgu"], params["wd"],
      params["final_norm"].reshape(1, D), params["lm_head_pad"])


# ----------------------------- params / RoPE tables -----------------------------
def init_params(key):
    def nrm(k, shape):
        return jax.random.normal(k, shape, dtype=jnp.float32) * 0.02

    keys = jax.random.split(key, 7)
    lm_head = nrm(keys[1], (HIDDEN, VOCAB))
    lm_head_pad = jnp.zeros((HIDDEN, VOCAB_PAD), jnp.float32).at[:, :VOCAB].set(lm_head)
    wg = nrm(keys[4], (N_LAYERS, HIDDEN, INTERMEDIATE))
    wu = nrm(keys[5], (N_LAYERS, HIDDEN, INTERMEDIATE))
    return {
        "embed_tokens": nrm(keys[0], (VOCAB, HIDDEN)),
        "lm_head_pad": lm_head_pad,
        "final_norm": jnp.ones((HIDDEN,), jnp.float32),
        "ln1": jnp.ones((N_LAYERS, 1, HIDDEN), jnp.float32),
        "ln2": jnp.ones((N_LAYERS, 1, HIDDEN), jnp.float32),
        "wqkv": nrm(keys[2], (N_LAYERS, HIDDEN, 3 * HIDDEN)),
        "wo": nrm(keys[3], (N_LAYERS, HIDDEN, HIDDEN)),
        "wgu": jnp.concatenate([wg, wu], axis=-1),         # fused gate|up (L, D, 2F)
        "wd": nrm(keys[6], (N_LAYERS, INTERMEDIATE, HIDDEN)),
    }


def _rope_tables(S):
    """cos/sin tiled for the fused (q|k) slab -> (S, 2D), and the block-diagonal
    rotate_half matrix (2D, 2D) so rotate_half(x) == x @ rot."""
    inv_freq = 1.0 / (ROPE_THETA ** (
        np.arange(0, HEAD_DIM, 2, dtype=np.float32) / HEAD_DIM))
    pos = np.arange(S, dtype=np.float32)
    freqs = pos[:, None] * inv_freq[None, :]                  # (S, Dh/2)
    emb = np.concatenate([freqs, freqs], axis=-1)             # (S, Dh)
    cos = np.tile(np.cos(emb), (1, 2 * N_HEADS)).astype(np.float32)   # (S, 2D)
    sin = np.tile(np.sin(emb), (1, 2 * N_HEADS)).astype(np.float32)
    half = HEAD_DIM // 2
    r = np.zeros((HEAD_DIM, HEAD_DIM), np.float32)
    r[half:, :half] = -np.eye(half, dtype=np.float32)         # rotate_half = x @ r
    r[:half, half:] = np.eye(half, dtype=np.float32)
    rot = np.kron(np.eye(2 * N_HEADS, dtype=np.float32), r)   # block-diag (2D, 2D)
    return jnp.asarray(cos), jnp.asarray(sin), jnp.asarray(rot)


# ----------------------------- forward (jitted glue + one pallas_call) -----------------------------
@jax.jit
def multimodal_decoder_forward(params, prefix_emb, input_ids, attention_mask, labels):
    """Mirrors MultimodalDecoder.forward:
       token_emb = embed(input_ids); full = cat([prefix_emb, token_emb], dim=1);
       llama(inputs_embeds=full, attention_mask, labels) -> {logits, loss}."""
    token_emb = jnp.take(params["embed_tokens"], input_ids, axis=0)     # gather glue
    h = jnp.concatenate([prefix_emb, token_emb], axis=1)                # (B, S, D)
    S = h.shape[1]

    cos2, sin2, rot2 = _rope_tables(S)

    # causal + padding additive bias (B, S, S)
    causal = jnp.tril(jnp.ones((S, S), jnp.float32))
    allowed = causal[None, :, :] * attention_mask.astype(jnp.float32)[:, None, :]
    bias = jnp.where(allowed > 0, 0.0, -1e9).astype(jnp.float32)

    logits_pad = fused_forward(h, cos2, sin2, rot2, bias, params)       # (B, S, VOCAB_PAD)
    logits = logits_pad[:, :, :VOCAB]

    # HF-style shifted cross-entropy with ignore_index=-100 (glue reduction).
    loss = None
    if labels is not None:
        shift_logits = logits[:, :-1, :]
        shift_labels = labels[:, 1:]
        valid = (shift_labels != -100).astype(jnp.float32)
        safe_labels = jnp.where(shift_labels == -100, 0, shift_labels)
        logprobs = jax.nn.log_softmax(shift_logits, axis=-1)
        picked = jnp.take_along_axis(logprobs, safe_labels[..., None], axis=-1)[..., 0]
        loss = -jnp.sum(picked * valid) / jnp.maximum(jnp.sum(valid), 1.0)

    return {"logits": logits, "loss": loss}


# ----------------------------- main -----------------------------
if __name__ == "__main__":
    B = 2          # batch
    P = 4          # prefix (multimodal) embedding length
    T = 8          # text token length
    S = P + T

    key = jax.random.PRNGKey(0)
    k_prefix, k_ids, k_params = jax.random.split(key, 3)

    params = init_params(k_params)
    prefix_emb = jax.random.normal(k_prefix, (B, P, HIDDEN), dtype=jnp.float32)
    input_ids = jax.random.randint(k_ids, (B, T), 0, VOCAB, dtype=jnp.int32)
    attention_mask = jnp.ones((B, S), dtype=jnp.int32)
    # labels: ignore the prefix positions (-100), supervise the text tokens
    labels = jnp.concatenate(
        [jnp.full((B, P), -100, dtype=jnp.int32), input_ids], axis=1
    )

    out = multimodal_decoder_forward(params, prefix_emb, input_ids, attention_mask, labels)
    logits = jax.block_until_ready(out["logits"])
    loss = jax.block_until_ready(out["loss"])

    assert logits.shape == (B, S, VOCAB)
    assert bool(jnp.isfinite(loss))
    assert bool(jnp.all(jnp.isfinite(logits)))
    # TODO(synk): the `generate` method (autoregressive decoding loop with KV cache)
    # is not reproduced; only the forward pass is implemented.
    print("KERNEL_OK")
</pallas_src>

<mosaic_0001>
module attributes {stable_mosaic.version = 11 : i64} {
  func.func @_fused_forward_kernel(%arg0: i32, %arg1: memref<1x12x32xf32, #tpu.memory_space<vmem>>, %arg2: memref<12x64xf32, #tpu.memory_space<vmem>>, %arg3: memref<12x64xf32, #tpu.memory_space<vmem>>, %arg4: memref<64x64xf32, #tpu.memory_space<vmem>>, %arg5: memref<1x12x12xf32, #tpu.memory_space<vmem>>, %arg6: memref<2x1x32xf32, #tpu.memory_space<vmem>>, %arg7: memref<2x32x96xf32, #tpu.memory_space<vmem>>, %arg8: memref<2x32x32xf32, #tpu.memory_space<vmem>>, %arg9: memref<2x1x32xf32, #tpu.memory_space<vmem>>, %arg10: memref<2x32x128xf32, #tpu.memory_space<vmem>>, %arg11: memref<2x64x32xf32, #tpu.memory_space<vmem>>, %arg12: memref<1x32xf32, #tpu.memory_space<vmem>>, %arg13: memref<32x128xf32, #tpu.memory_space<vmem>>, %arg14: memref<1x12x128xf32, #tpu.memory_space<vmem>>) attributes {dimension_semantics = [#tpu.dimension_semantics<parallel>], iteration_bounds = array<i64: 2>, scalar_prefetch = 0 : i64, scratch_operands = 0 : i64, tpu.core_type = #tpu.core_type<tc>, window_params = [{transform_indices = @transform_0, window_bounds = array<i64: 1, 12, 32>}, {pipeline_mode = #tpu.pipeline_mode<synchronous>, transform_indices = @transform_1, window_bounds = array<i64: 12, 64>}, {pipeline_mode = #tpu.pipeline_mode<synchronous>, transform_indices = @transform_2, window_bounds = array<i64: 12, 64>}, {pipeline_mode = #tpu.pipeline_mode<synchronous>, transform_indices = @transform_3, window_bounds = array<i64: 64, 64>}, {transform_indices = @transform_4, window_bounds = array<i64: 1, 12, 12>}, {pipeline_mode = #tpu.pipeline_mode<synchronous>, transform_indices = @transform_5, window_bounds = array<i64: 2, 1, 32>}, {pipeline_mode = #tpu.pipeline_mode<synchronous>, transform_indices = @transform_6, window_bounds = array<i64: 2, 32, 96>}, {pipeline_mode = #tpu.pipeline_mode<synchronous>, transform_indices = @transform_7, window_bounds = array<i64: 2, 32, 32>}, {pipeline_mode = #tpu.pipeline_mode<synchronous>, transform_indices = @transform_8, window_bounds = array<i64: 2, 1, 32>}, {pipeline_mode = #tpu.pipeline_mode<synchronous>, transform_indices = @transform_9, window_bounds = array<i64: 2, 32, 128>}, {pipeline_mode = #tpu.pipeline_mode<synchronous>, transform_indices = @transform_10, window_bounds = array<i64: 2, 64, 32>}, {pipeline_mode = #tpu.pipeline_mode<synchronous>, transform_indices = @transform_11, window_bounds = array<i64: 1, 32>}, {pipeline_mode = #tpu.pipeline_mode<synchronous>, transform_indices = @transform_12, window_bounds = array<i64: 32, 128>}, {transform_indices = @transform_13, window_bounds = array<i64: 1, 12, 128>}]} {
    %c0 = arith.constant 0 : index
    %c0_0 = arith.constant 0 : index
    %c0_1 = arith.constant 0 : index
    %0 = vector.load %arg1[%c0, %c0_0, %c0_1] : memref<1x12x32xf32, #tpu.memory_space<vmem>>, vector<1x12x32xf32>
    %1 = vector.shape_cast %0 : vector<1x12x32xf32> to vector<12x32xf32>
    %c0_2 = arith.constant 0 : index
    %c0_3 = arith.constant 0 : index
    %2 = vector.load %arg2[%c0_2, %c0_3] : memref<12x64xf32, #tpu.memory_space<vmem>>, vector<12x64xf32>
    %c0_4 = arith.constant 0 : index
    %c0_5 = arith.constant 0 : index
    %3 = vector.load %arg3[%c0_4, %c0_5] : memref<12x64xf32, #tpu.memory_space<vmem>>, vector<12x64xf32>
    %c0_6 = arith.constant 0 : index
    %c0_7 = arith.constant 0 : index
    %4 = vector.load %arg4[%c0_6, %c0_7] : memref<64x64xf32, #tpu.memory_space<vmem>>, vector<64x64xf32>
    %c0_8 = arith.constant 0 : index
    %c0_9 = arith.constant 0 : index
    %c0_10 = arith.constant 0 : index
    %5 = vector.load %arg5[%c0_8, %c0_9, %c0_10] : memref<1x12x12xf32, #tpu.memory_space<vmem>>, vector<1x12x12xf32>
    %6 = vector.shape_cast %5 : vector<1x12x12xf32> to vector<12x12xf32>
    %c0_11 = arith.constant 0 : index
    %c0_12 = arith.constant 0 : index
    %c0_13 = arith.constant 0 : index
    %7 = vector.load %arg6[%c0_11, %c0_12, %c0_13] : memref<2x1x32xf32, #tpu.memory_space<vmem>>, vector<1x1x32xf32>
    %8 = vector.shape_cast %7 : vector<1x1x32xf32> to vector<1x32xf32>
    %9 = arith.mulf %1, %1 : vector<12x32xf32>
    %cst = arith.constant dense<0.000000e+00> : vector<12xf32>
    %10 = vector.multi_reduction <add>, %9, %cst [1] : vector<12x32xf32> to vector<12xf32>
    %11 = vector.shape_cast %10 : vector<12xf32> to vector<12x1xf32>
    %cst_14 = arith.constant 3.200000e+01 : f32
    %12 = vector.broadcast %cst_14 : f32 to vector<12x1xf32>
    %13 = arith.divf %11, %12 : vector<12x1xf32>
    %cst_15 = arith.constant 9.99999974E-6 : f32
    %14 = vector.broadcast %cst_15 : f32 to vector<12x1xf32>
    %15 = arith.addf %13, %14 : vector<12x1xf32>
    %16 = math.rsqrt %15 : vector<12x1xf32>
    %17 = vector.broadcast %16 : vector<12x1xf32> to vector<12x32xf32>
    %18 = arith.mulf %1, %17 : vector<12x32xf32>
    %19 = vector.broadcast %8 : vector<1x32xf32> to vector<12x32xf32>
    %20 = arith.mulf %18, %19 : vector<12x32xf32>
    %c0_16 = arith.constant 0 : index
    %c0_17 = arith.constant 0 : index
    %c0_18 = arith.constant 0 : index
    %21 = vector.load %arg7[%c0_16, %c0_17, %c0_18] : memref<2x32x96xf32, #tpu.memory_space<vmem>>, vector<1x32x96xf32>
    %22 = vector.shape_cast %21 : vector<1x32x96xf32> to vector<32x96xf32>
    %cst_19 = arith.constant dense<0.000000e+00> : vector<12x96xf32>
    %23 = tpu.matmul %20, %22, %cst_19 {dimension_numbers = #tpu.dot_dimension_numbers<[1], [0], [0], [1], [0, 0, 1, 1], [], []>} : vector<12x32xf32>, vector<32x96xf32>, vector<12x96xf32> -> vector<12x96xf32>
    %24 = vector.extract_strided_slice %23 {offsets = [0, 0], sizes = [12, 64], strides = [1, 1]} : vector<12x96xf32> to vector<12x64xf32>
    %25 = arith.mulf %24, %2 : vector<12x64xf32>
    %cst_20 = arith.constant dense<0.000000e+00> : vector<12x64xf32>
    %26 = tpu.matmul %24, %4, %cst_20 {dimension_numbers = #tpu.dot_dimension_numbers<[1], [0], [0], [1], [0, 0, 1, 1], [], []>} : vector<12x64xf32>, vector<64x64xf32>, vector<12x64xf32> -> vector<12x64xf32>
    %27 = arith.mulf %26, %3 : vector<12x64xf32>
    %28 = arith.addf %25, %27 : vector<12x64xf32>
    %29 = vector.extract_strided_slice %28 {offsets = [0, 0], sizes = [12, 32], strides = [1, 1]} : vector<12x64xf32> to vector<12x32xf32>
    %cst_21 = arith.constant 0.353553385 : f32
    %30 = vector.broadcast %cst_21 : f32 to vector<12x32xf32>
    %31 = arith.mulf %29, %30 : vector<12x32xf32>
    %32 = vector.extract_strided_slice %28 {offsets = [0, 32], sizes = [12, 32], strides = [1, 1]} : vector<12x64xf32> to vector<12x32xf32>
    %33 = vector.extract_strided_slice %23 {offsets = [0, 64], sizes = [12, 32], strides = [1, 1]} : vector<12x96xf32> to vector<12x32xf32>
    %c0_22 = arith.constant 0 : index
    %c0_23 = arith.constant 0 : index
    %c0_24 = arith.constant 0 : index
    %34 = vector.load %arg8[%c0_22, %c0_23, %c0_24] : memref<2x32x32xf32, #tpu.memory_space<vmem>>, vector<1x32x32xf32>
    %35 = vector.shape_cast %34 : vector<1x32x32xf32> to vector<32x32xf32>
    %cst_25 = arith.constant 0.000000e+00 : f32
    %36 = vector.broadcast %cst_25 : f32 to vector<12x32xf32>
    %37 = vector.extract_strided_slice %31 {offsets = [0, 0], sizes = [12, 8], strides = [1, 1]} : vector<12x32xf32> to vector<12x8xf32>
    %38 = vector.extract_strided_slice %32 {offsets = [0, 0], sizes = [12, 8], strides = [1, 1]} : vector<12x32xf32> to vector<12x8xf32>
    %39 = vector.extract_strided_slice %33 {offsets = [0, 0], sizes = [12, 8], strides = [1, 1]} : vector<12x32xf32> to vector<12x8xf32>
    %cst_26 = arith.constant dense<0.000000e+00> : vector<12x12xf32>
    %40 = tpu.matmul %37, %38, %cst_26 {dimension_numbers = #tpu.dot_dimension_numbers<[1], [1], [0], [0], [0, 0, 1, 0], [], []>} : vector<12x8xf32>, vector<12x8xf32>, vector<12x12xf32> -> vector<12x12xf32>
    %41 = arith.addf %40, %6 : vector<12x12xf32>
    %cst_27 = arith.constant dense<0xFF800000> : vector<12xf32>
    %42 = vector.multi_reduction <maximumf>, %41, %cst_27 [1] : vector<12x12xf32> to vector<12xf32>
    %43 = vector.shape_cast %42 : vector<12xf32> to vector<12x1xf32>
    %44 = vector.broadcast %43 : vector<12x1xf32> to vector<12x12xf32>
    %45 = arith.subf %41, %44 : vector<12x12xf32>
    %46 = math.exp %45 : vector<12x12xf32>
    %cst_28 = arith.constant dense<0.000000e+00> : vector<12xf32>
    %47 = vector.multi_reduction <add>, %46, %cst_28 [1] : vector<12x12xf32> to vector<12xf32>
    %48 = vector.shape_cast %47 : vector<12xf32> to vector<12x1xf32>
    %49 = tpu.reciprocal %48 {approx = true} : vector<12x1xf32> -> vector<12x1xf32>
    %50 = vector.broadcast %49 : vector<12x1xf32> to vector<12x12xf32>
    %51 = arith.mulf %46, %50 : vector<12x12xf32>
    %cst_29 = arith.constant dense<0.000000e+00> : vector<12x8xf32>
    %52 = tpu.matmul %51, %39, %cst_29 {dimension_numbers = #tpu.dot_dimension_numbers<[1], [0], [0], [1], [0, 0, 1, 1], [], []>} : vector<12x12xf32>, vector<12x8xf32>, vector<12x8xf32> -> vector<12x8xf32>
    %53 = vector.extract_strided_slice %35 {offsets = [0, 0], sizes = [8, 32], strides = [1, 1]} : vector<32x32xf32> to vector<8x32xf32>
    %cst_30 = arith.constant dense<0.000000e+00> : vector<12x32xf32>
    %54 = tpu.matmul %52, %53, %cst_30 {dimension_numbers = #tpu.dot_dimension_numbers<[1], [0], [0], [1], [0, 0, 1, 1], [], []>} : vector<12x8xf32>, vector<8x32xf32>, vector<12x32xf32> -> vector<12x32xf32>
    %55 = arith.addf %36, %54 : vector<12x32xf32>
    %56 = vector.extract_strided_slice %31 {offsets = [0, 8], sizes = [12, 8], strides = [1, 1]} : vector<12x32xf32> to vector<12x8xf32>
    %57 = vector.extract_strided_slice %32 {offsets = [0, 8], sizes = [12, 8], strides = [1, 1]} : vector<12x32xf32> to vector<12x8xf32>
    %58 = vector.extract_strided_slice %33 {offsets = [0, 8], sizes = [12, 8], strides = [1, 1]} : vector<12x32xf32> to vector<12x8xf32>
    %cst_31 = arith.constant dense<0.000000e+00> : vector<12x12xf32>
    %59 = tpu.matmul %56, %57, %cst_31 {dimension_numbers = #tpu.dot_dimension_numbers<[1], [1], [0], [0], [0, 0, 1, 0], [], []>} : vector<12x8xf32>, vector<12x8xf32>, vector<12x12xf32> -> vector<12x12xf32>
    %60 = arith.addf %59, %6 : vector<12x12xf32>
    %cst_32 = arith.constant dense<0xFF800000> : vector<12xf32>
    %61 = vector.multi_reduction <maximumf>, %60, %cst_32 [1] : vector<12x12xf32> to vector<12xf32>
    %62 = vector.shape_cast %61 : vector<12xf32> to vector<12x1xf32>
    %63 = vector.broadcast %62 : vector<12x1xf32> to vector<12x12xf32>
    %64 = arith.subf %60, %63 : vector<12x12xf32>
    %65 = math.exp %64 : vector<12x12xf32>
    %cst_33 = arith.constant dense<0.000000e+00> : vector<12xf32>
    %66 = vector.multi_reduction <add>, %65, %cst_33 [1] : vector<12x12xf32> to vector<12xf32>
    %67 = vector.shape_cast %66 : vector<12xf32> to vector<12x1xf32>
    %68 = tpu.reciprocal %67 {approx = true} : vector<12x1xf32> -> vector<12x1xf32>
    %69 = vector.broadcast %68 : vector<12x1xf32> to vector<12x12xf32>
    %70 = arith.mulf %65, %69 : vector<12x12xf32>
    %cst_34 = arith.constant dense<0.000000e+00> : vector<12x8xf32>
    %71 = tpu.matmul %70, %58, %cst_34 {dimension_numbers = #tpu.dot_dimension_numbers<[1], [0], [0], [1], [0, 0, 1, 1], [], []>} : vector<12x12xf32>, vector<12x8xf32>, vector<12x8xf32> -> vector<12x8xf32>
    %72 = vector.extract_strided_slice %35 {offsets = [8, 0], sizes = [8, 32], strides = [1, 1]} : vector<32x32xf32> to vector<8x32xf32>
    %cst_35 = arith.constant dense<0.000000e+00> : vector<12x32xf32>
    %73 = tpu.matmul %71, %72, %cst_35 {dimension_numbers = #tpu.dot_dimension_numbers<[1], [0], [0], [1], [0, 0, 1, 1], [], []>} : vector<12x8xf32>, vector<8x32xf32>, vector<12x32xf32> -> vector<12x32xf32>
    %74 = arith.addf %55, %73 : vector<12x32xf32>
    %75 = vector.extract_strided_slice %31 {offsets = [0, 16], sizes = [12, 8], strides = [1, 1]} : vector<12x32xf32> to vector<12x8xf32>
    %76 = vector.extract_strided_slice %32 {offsets = [0, 16], sizes = [12, 8], strides = [1, 1]} : vector<12x32xf32> to vector<12x8xf32>
    %77 = vector.extract_strided_slice %33 {offsets = [0, 16], sizes = [12, 8], strides = [1, 1]} : vector<12x32xf32> to vector<12x8xf32>
    %cst_36 = arith.constant dense<0.000000e+00> : vector<12x12xf32>
    %78 = tpu.matmul %75, %76, %cst_36 {dimension_numbers = #tpu.dot_dimension_numbers<[1], [1], [0], [0], [0, 0, 1, 0], [], []>} : vector<12x8xf32>, vector<12x8xf32>, vector<12x12xf32> -> vector<12x12xf32>
    %79 = arith.addf %78, %6 : vector<12x12xf32>
    %cst_37 = arith.constant dense<0xFF800000> : vector<12xf32>
    %80 = vector.multi_reduction <maximumf>, %79, %cst_37 [1] : vector<12x12xf32> to vector<12xf32>
    %81 = vector.shape_cast %80 : vector<12xf32> to vector<12x1xf32>
    %82 = vector.broadcast %81 : vector<12x1xf32> to vector<12x12xf32>
    %83 = arith.subf %79, %82 : vector<12x12xf32>
    %84 = math.exp %83 : vector<12x12xf32>
    %cst_38 = arith.constant dense<0.000000e+00> : vector<12xf32>
    %85 = vector.multi_reduction <add>, %84, %cst_38 [1] : vector<12x12xf32> to vector<12xf32>
    %86 = vector.shape_cast %85 : vector<12xf32> to vector<12x1xf32>
    %87 = tpu.reciprocal %86 {approx = true} : vector<12x1xf32> -> vector<12x1xf32>
    %88 = vector.broadcast %87 : vector<12x1xf32> to vector<12x12xf32>
    %89 = arith.mulf %84, %88 : vector<12x12xf32>
    %cst_39 = arith.constant dense<0.000000e+00> : vector<12x8xf32>
    %90 = tpu.matmul %89, %77, %cst_39 {dimension_numbers = #tpu.dot_dimension_numbers<[1], [0], [0], [1], [0, 0, 1, 1], [], []>} : vector<12x12xf32>, vector<12x8xf32>, vector<12x8xf32> -> vector<12x8xf32>
    %91 = vector.extract_strided_slice %35 {offsets = [16, 0], sizes = [8, 32], strides = [1, 1]} : vector<32x32xf32> to vector<8x32xf32>
    %cst_40 = arith.constant dense<0.000000e+00> : vector<12x32xf32>
    %92 = tpu.matmul %90, %91, %cst_40 {dimension_numbers = #tpu.dot_dimension_numbers<[1], [0], [0], [1], [0, 0, 1, 1], [], []>} : vector<12x8xf32>, vector<8x32xf32>, vector<12x32xf32> -> vector<12x32xf32>
    %93 = arith.addf %74, %92 : vector<12x32xf32>
    %94 = vector.extract_strided_slice %31 {offsets = [0, 24], sizes = [12, 8], strides = [1, 1]} : vector<12x32xf32> to vector<12x8xf32>
    %95 = vector.extract_strided_slice %32 {offsets = [0, 24], sizes = [12, 8], strides = [1, 1]} : vector<12x32xf32> to vector<12x8xf32>
    %96 = vector.extract_strided_slice %33 {offsets = [0, 24], sizes = [12, 8], strides = [1, 1]} : vector<12x32xf32> to vector<12x8xf32>
    %cst_41 = arith.constant dense<0.000000e+00> : vector<12x12xf32>
    %97 = tpu.matmul %94, %95, %cst_41 {dimension_numbers = #tpu.dot_dimension_numbers<[1], [1], [0], [0], [0, 0, 1, 0], [], []>} : vector<12x8xf32>, vector<12x8xf32>, vector<12x12xf32> -> vector<12x12xf32>
    %98 = arith.addf %97, %6 : vector<12x12xf32>
    %cst_42 = arith.constant dense<0xFF800000> : vector<12xf32>
    %99 = vector.multi_reduction <maximumf>, %98, %cst_42 [1] : vector<12x12xf32> to vector<12xf32>
    %100 = vector.shape_cast %99 : vector<12xf32> to vector<12x1xf32>
    %101 = vector.broadcast %100 : vector<12x1xf32> to vector<12x12xf32>
    %102 = arith.subf %98, %101 : vector<12x12xf32>
    %103 = math.exp %102 : vector<12x12xf32>
    %cst_43 = arith.constant dense<0.000000e+00> : vector<12xf32>
    %104 = vector.multi_reduction <add>, %103, %cst_43 [1] : vector<12x12xf32> to vector<12xf32>
    %105 = vector.shape_cast %104 : vector<12xf32> to vector<12x1xf32>
    %106 = tpu.reciprocal %105 {approx = true} : vector<12x1xf32> -> vector<12x1xf32>
    %107 = vector.broadcast %106 : vector<12x1xf32> to vector<12x12xf32>
    %108 = arith.mulf %103, %107 : vector<12x12xf32>
    %cst_44 = arith.constant dense<0.000000e+00> : vector<12x8xf32>
    %109 = tpu.matmul %108, %96, %cst_44 {dimension_numbers = #tpu.dot_dimension_numbers<[1], [0], [0], [1], [0, 0, 1, 1], [], []>} : vector<12x12xf32>, vector<12x8xf32>, vector<12x8xf32> -> vector<12x8xf32>
    %110 = vector.extract_strided_slice %35 {offsets = [24, 0], sizes = [8, 32], strides = [1, 1]} : vector<32x32xf32> to vector<8x32xf32>
    %cst_45 = arith.constant dense<0.000000e+00> : vector<12x32xf32>
    %111 = tpu.matmul %109, %110, %cst_45 {dimension_numbers = #tpu.dot_dimension_numbers<[1], [0], [0], [1], [0, 0, 1, 1], [], []>} : vector<12x8xf32>, vector<8x32xf32>, vector<12x32xf32> -> vector<12x32xf32>
    %112 = arith.addf %93, %111 : vector<12x32xf32>
    %113 = arith.addf %1, %112 : vector<12x32xf32>
    %c0_46 = arith.constant 0 : index
    %c0_47 = arith.constant 0 : index
    %c0_48 = arith.constant 0 : index
    %114 = vector.load %arg9[%c0_46, %c0_47, %c0_48] : memref<2x1x32xf32, #tpu.memory_space<vmem>>, vector<1x1x32xf32>
    %115 = vector.shape_cast %114 : vector<1x1x32xf32> to vector<1x32xf32>
    %116 = arith.mulf %113, %113 : vector<12x32xf32>
    %cst_49 = arith.constant dense<0.000000e+00> : vector<12xf32>
    %117 = vector.multi_reduction <add>, %116, %cst_49 [1] : vector<12x32xf32> to vector<12xf32>
    %118 = vector.shape_cast %117 : vector<12xf32> to vector<12x1xf32>
    %cst_50 = arith.constant 3.200000e+01 : f32
    %119 = vector.broadcast %cst_50 : f32 to vector<12x1xf32>
    %120 = arith.divf %118, %119 : vector<12x1xf32>
    %cst_51 = arith.constant 9.99999974E-6 : f32
    %121 = vector.broadcast %cst_51 : f32 to vector<12x1xf32>
    %122 = arith.addf %120, %121 : vector<12x1xf32>
    %123 = math.rsqrt %122 : vector<12x1xf32>
    %124 = vector.broadcast %123 : vector<12x1xf32> to vector<12x32xf32>
    %125 = arith.mulf %113, %124 : vector<12x32xf32>
    %126 = vector.broadcast %115 : vector<1x32xf32> to vector<12x32xf32>
    %127 = arith.mulf %125, %126 : vector<12x32xf32>
    %c0_52 = arith.constant 0 : index
    %c0_53 = arith.constant 0 : index
    %c0_54 = arith.constant 0 : index
    %128 = vector.load %arg10[%c0_52, %c0_53, %c0_54] : memref<2x32x128xf32, #tpu.memory_space<vmem>>, vector<1x32x128xf32>
    %129 = vector.shape_cast %128 : vector<1x32x128xf32> to vector<32x128xf32>
    %cst_55 = arith.constant dense<0.000000e+00> : vector<12x128xf32>
    %130 = tpu.matmul %127, %129, %cst_55 {dimension_numbers = #tpu.dot_dimension_numbers<[1], [0], [0], [1], [0, 0, 1, 1], [], []>} : vector<12x32xf32>, vector<32x128xf32>, vector<12x128xf32> -> vector<12x128xf32>
    %131 = vector.extract_strided_slice %130 {offsets = [0, 0], sizes = [12, 64], strides = [1, 1]} : vector<12x128xf32> to vector<12x64xf32>
    %132 = vector.extract_strided_slice %130 {offsets = [0, 64], sizes = [12, 64], strides = [1, 1]} : vector<12x128xf32> to vector<12x64xf32>
    %133 = arith.negf %131 : vector<12x64xf32>
    %134 = math.exp %133 : vector<12x64xf32>
    %cst_56 = arith.constant 1.000000e+00 : f32
    %135 = vector.broadcast %cst_56 : f32 to vector<12x64xf32>
    %136 = arith.addf %135, %134 : vector<12x64xf32>
    %137 = arith.divf %135, %136 : vector<12x64xf32>
    %138 = arith.mulf %131, %137 : vector<12x64xf32>
    %139 = arith.mulf %138, %132 : vector<12x64xf32>
    %c0_57 = arith.constant 0 : index
    %c0_58 = arith.constant 0 : index
    %c0_59 = arith.constant 0 : index
    %140 = vector.load %arg11[%c0_57, %c0_58, %c0_59] : memref<2x64x32xf32, #tpu.memory_space<vmem>>, vector<1x64x32xf32>
    %141 = vector.shape_cast %140 : vector<1x64x32xf32> to vector<64x32xf32>
    %cst_60 = arith.constant dense<0.000000e+00> : vector<12x32xf32>
    %142 = tpu.matmul %139, %141, %cst_60 {dimension_numbers = #tpu.dot_dimension_numbers<[1], [0], [0], [1], [0, 0, 1, 1], [], []>} : vector<12x64xf32>, vector<64x32xf32>, vector<12x32xf32> -> vector<12x32xf32>
    %143 = arith.addf %113, %142 : vector<12x32xf32>
    %c1 = arith.constant 1 : index
    %c0_61 = arith.constant 0 : index
    %c0_62 = arith.constant 0 : index
    %144 = vector.load %arg6[%c1, %c0_61, %c0_62] : memref<2x1x32xf32, #tpu.memory_space<vmem>>, vector<1x1x32xf32>
    %145 = vector.shape_cast %144 : vector<1x1x32xf32> to vector<1x32xf32>
    %146 = arith.mulf %143, %143 : vector<12x32xf32>
    %cst_63 = arith.constant dense<0.000000e+00> : vector<12xf32>
    %147 = vector.multi_reduction <add>, %146, %cst_63 [1] : vector<12x32xf32> to vector<12xf32>
    %148 = vector.shape_cast %147 : vector<12xf32> to vector<12x1xf32>
    %cst_64 = arith.constant 3.200000e+01 : f32
    %149 = vector.broadcast %cst_64 : f32 to vector<12x1xf32>
    %150 = arith.divf %148, %149 : vector<12x1xf32>
    %cst_65 = arith.constant 9.99999974E-6 : f32
    %151 = vector.broadcast %cst_65 : f32 to vector<12x1xf32>
    %152 = arith.addf %150, %151 : vector<12x1xf32>
    %153 = math.rsqrt %152 : vector<12x1xf32>
    %154 = vector.broadcast %153 : vector<12x1xf32> to vector<12x32xf32>
    %155 = arith.mulf %143, %154 : vector<12x32xf32>
    %156 = vector.broadcast %145 : vector<1x32xf32> to vector<12x32xf32>
    %157 = arith.mulf %155, %156 : vector<12x32xf32>
    %c1_66 = arith.constant 1 : index
    %c0_67 = arith.constant 0 : index
    %c0_68 = arith.constant 0 : index
    %158 = vector.load %arg7[%c1_66, %c0_67, %c0_68] : memref<2x32x96xf32, #tpu.memory_space<vmem>>, vector<1x32x96xf32>
    %159 = vector.shape_cast %158 : vector<1x32x96xf32> to vector<32x96xf32>
    %cst_69 = arith.constant dense<0.000000e+00> : vector<12x96xf32>
    %160 = tpu.matmul %157, %159, %cst_69 {dimension_numbers = #tpu.dot_dimension_numbers<[1], [0], [0], [1], [0, 0, 1, 1], [], []>} : vector<12x32xf32>, vector<32x96xf32>, vector<12x96xf32> -> vector<12x96xf32>
    %161 = vector.extract_strided_slice %160 {offsets = [0, 0], sizes = [12, 64], strides = [1, 1]} : vector<12x96xf32> to vector<12x64xf32>
    %162 = arith.mulf %161, %2 : vector<12x64xf32>
    %cst_70 = arith.constant dense<0.000000e+00> : vector<12x64xf32>
    %163 = tpu.matmul %161, %4, %cst_70 {dimension_numbers = #tpu.dot_dimension_numbers<[1], [0], [0], [1], [0, 0, 1, 1], [], []>} : vector<12x64xf32>, vector<64x64xf32>, vector<12x64xf32> -> vector<12x64xf32>
    %164 = arith.mulf %163, %3 : vector<12x64xf32>
    %165 = arith.addf %162, %164 : vector<12x64xf32>
    %166 = vector.extract_strided_slice %165 {offsets = [0, 0], sizes = [12, 32], strides = [1, 1]} : vector<12x64xf32> to vector<12x32xf32>
    %cst_71 = arith.constant 0.353553385 : f32
    %167 = vector.broadcast %cst_71 : f32 to vector<12x32xf32>
    %168 = arith.mulf %166, %167 : vector<12x32xf32>
    %169 = vector.extract_strided_slice %165 {offsets = [0, 32], sizes = [12, 32], strides = [1, 1]} : vector<12x64xf32> to vector<12x32xf32>
    %170 = vector.extract_strided_slice %160 {offsets = [0, 64], sizes = [12, 32], strides = [1, 1]} : vector<12x96xf32> to vector<12x32xf32>
    %c1_72 = arith.constant 1 : index
    %c0_73 = arith.constant 0 : index
    %c0_74 = arith.constant 0 : index
    %171 = vector.load %arg8[%c1_72, %c0_73, %c0_74] : memref<2x32x32xf32, #tpu.memory_space<vmem>>, vector<1x32x32xf32>
    %172 = vector.shape_cast %171 : vector<1x32x32xf32> to vector<32x32xf32>
    %cst_75 = arith.constant 0.000000e+00 : f32
    %173 = vector.broadcast %cst_75 : f32 to vector<12x32xf32>
    %174 = vector.extract_strided_slice %168 {offsets = [0, 0], sizes = [12, 8], strides = [1, 1]} : vector<12x32xf32> to vector<12x8xf32>
    %175 = vector.extract_strided_slice %169 {offsets = [0, 0], sizes = [12, 8], strides = [1, 1]} : vector<12x32xf32> to vector<12x8xf32>
    %176 = vector.extract_strided_slice %170 {offsets = [0, 0], sizes = [12, 8], strides = [1, 1]} : vector<12x32xf32> to vector<12x8xf32>
    %cst_76 = arith.constant dense<0.000000e+00> : vector<12x12xf32>
    %177 = tpu.matmul %174, %175, %cst_76 {dimension_numbers = #tpu.dot_dimension_numbers<[1], [1], [0], [0], [0, 0, 1, 0], [], []>} : vector<12x8xf32>, vector<12x8xf32>, vector<12x12xf32> -> vector<12x12xf32>
    %178 = arith.addf %177, %6 : vector<12x12xf32>
    %cst_77 = arith.constant dense<0xFF800000> : vector<12xf32>
    %179 = vector.multi_reduction <maximumf>, %178, %cst_77 [1] : vector<12x12xf32> to vector<12xf32>
    %180 = vector.shape_cast %179 : vector<12xf32> to vector<12x1xf32>
    %181 = vector.broadcast %180 : vector<12x1xf32> to vector<12x12xf32>
    %182 = arith.subf %178, %181 : vector<12x12xf32>
    %183 = math.exp %182 : vector<12x12xf32>
    %cst_78 = arith.constant dense<0.000000e+00> : vector<12xf32>
    %184 = vector.multi_reduction <add>, %183, %cst_78 [1] : vector<12x12xf32> to vector<12xf32>
    %185 = vector.shape_cast %184 : vector<12xf32> to vector<12x1xf32>
    %186 = tpu.reciprocal %185 {approx = true} : vector<12x1xf32> -> vector<12x1xf32>
    %187 = vector.broadcast %186 : vector<12x1xf32> to vector<12x12xf32>
    %188 = arith.mulf %183, %187 : vector<12x12xf32>
    %cst_79 = arith.constant dense<0.000000e+00> : vector<12x8xf32>
    %189 = tpu.matmul %188, %176, %cst_79 {dimension_numbers = #tpu.dot_dimension_numbers<[1], [0], [0], [1], [0, 0, 1, 1], [], []>} : vector<12x12xf32>, vector<12x8xf32>, vector<12x8xf32> -> vector<12x8xf32>
    %190 = vector.extract_strided_slice %172 {offsets = [0, 0], sizes = [8, 32], strides = [1, 1]} : vector<32x32xf32> to vector<8x32xf32>
    %cst_80 = arith.constant dense<0.000000e+00> : vector<12x32xf32>
    %191 = tpu.matmul %189, %190, %cst_80 {dimension_numbers = #tpu.dot_dimension_numbers<[1], [0], [0], [1], [0, 0, 1, 1], [], []>} : vector<12x8xf32>, vector<8x32xf32>, vector<12x32xf32> -> vector<12x32xf32>
    %192 = arith.addf %173, %191 : vector<12x32xf32>
    %193 = vector.extract_strided_slice %168 {offsets = [0, 8], sizes = [12, 8], strides = [1, 1]} : vector<12x32xf32> to vector<12x8xf32>
    %194 = vector.extract_strided_slice %169 {offsets = [0, 8], sizes = [12, 8], strides = [1, 1]} : vector<12x32xf32> to vector<12x8xf32>
    %195 = vector.extract_strided_slice %170 {offsets = [0, 8], sizes = [12, 8], strides = [1, 1]} : vector<12x32xf32> to vector<12x8xf32>
    %cst_81 = arith.constant dense<0.000000e+00> : vector<12x12xf32>
    %196 = tpu.matmul %193, %194, %cst_81 {dimension_numbers = #tpu.dot_dimension_numbers<[1], [1], [0], [0], [0, 0, 1, 0], [], []>} : vector<12x8xf32>, vector<12x8xf32>, vector<12x12xf32> -> vector<12x12xf32>
    %197 = arith.addf %196, %6 : vector<12x12xf32>
    %cst_82 = arith.constant dense<0xFF800000> : vector<12xf32>
    %198 = vector.multi_reduction <maximumf>, %197, %cst_82 [1] : vector<12x12xf32> to vector<12xf32>
    %199 = vector.shape_cast %198 : vector<12xf32> to vector<12x1xf32>
    %200 = vector.broadcast %199 : vector<12x1xf32> to vector<12x12xf32>
    %201 = arith.subf %197, %200 : vector<12x12xf32>
    %202 = math.exp %201 : vector<12x12xf32>
    %cst_83 = arith.constant dense<0.000000e+00> : vector<12xf32>
    %203 = vector.multi_reduction <add>, %202, %cst_83 [1] : vector<12x12xf32> to vector<12xf32>
    %204 = vector.shape_cast %203 : vector<12xf32> to vector<12x1xf32>
    %205 = tpu.reciprocal %204 {approx = true} : vector<12x1xf32> -> vector<12x1xf32>
    %206 = vector.broadcast %205 : vector<12x1xf32> to vector<12x12xf32>
    %207 = arith.mulf %202, %206 : vector<12x12xf32>
    %cst_84 = arith.constant dense<0.000000e+00> : vector<12x8xf32>
    %208 = tpu.matmul %207, %195, %cst_84 {dimension_numbers = #tpu.dot_dimension_numbers<[1], [0], [0], [1], [0, 0, 1, 1], [], []>} : vector<12x12xf32>, vector<12x8xf32>, vector<12x8xf32> -> vector<12x8xf32>
    %209 = vector.extract_strided_slice %172 {offsets = [8, 0], sizes = [8, 32], strides = [1, 1]} : vector<32x32xf32> to vector<8x32xf32>
    %cst_85 = arith.constant dense<0.000000e+00> : vector<12x32xf32>
    %210 = tpu.matmul %208, %209, %cst_85 {dimension_numbers = #tpu.dot_dimension_numbers<[1], [0], [0], [1], [0, 0, 1, 1], [], []>} : vector<12x8xf32>, vector<8x32xf32>, vector<12x32xf32> -> vector<12x32xf32>
    %211 = arith.addf %192, %210 : vector<12x32xf32>
    %212 = vector.extract_strided_slice %168 {offsets = [0, 16], sizes = [12, 8], strides = [1, 1]} : vector<12x32xf32> to vector<12x8xf32>
    %213 = vector.extract_strided_slice %169 {offsets = [0, 16], sizes = [12, 8], strides = [1, 1]} : vector<12x32xf32> to vector<12x8xf32>
    %214 = vector.extract_strided_slice %170 {offsets = [0, 16], sizes = [12, 8], strides = [1, 1]} : vector<12x32xf32> to vector<12x8xf32>
    %cst_86 = arith.constant dense<0.000000e+00> : vector<12x12xf32>
    %215 = tpu.matmul %212, %213, %cst_86 {dimension_numbers = #tpu.dot_dimension_numbers<[1], [1], [0], [0], [0, 0, 1, 0], [], []>} : vector<12x8xf32>, vector<12x8xf32>, vector<12x12xf32> -> vector<12x12xf32>
    %216 = arith.addf %215, %6 : vector<12x12xf32>
    %cst_87 = arith.constant dense<0xFF800000> : vector<12xf32>
    %217 = vector.multi_reduction <maximumf>, %216, %cst_87 [1] : vector<12x12xf32> to vector<12xf32>
    %218 = vector.shape_cast %217 : vector<12xf32> to vector<12x1xf32>
    %219 = vector.broadcast %218 : vector<12x1xf32> to vector<12x12xf32>
    %220 = arith.subf %216, %219 : vector<12x12xf32>
    %221 = math.exp %220 : vector<12x12xf32>
    %cst_88 = arith.constant dense<0.000000e+00> : vector<12xf32>
    %222 = vector.multi_reduction <add>, %221, %cst_88 [1] : vector<12x12xf32> to vector<12xf32>
    %223 = vector.shape_cast %222 : vector<12xf32> to vector<12x1xf32>
    %224 = tpu.reciprocal %223 {approx = true} : vector<12x1xf32> -> vector<12x1xf32>
    %225 = vector.broadcast %224 : vector<12x1xf32> to vector<12x12xf32>
    %226 = arith.mulf %221, %225 : vector<12x12xf32>
    %cst_89 = arith.constant dense<0.000000e+00> : vector<12x8xf32>
    %227 = tpu.matmul %226, %214, %cst_89 {dimension_numbers = #tpu.dot_dimension_numbers<[1], [0], [0], [1], [0, 0, 1, 1], [], []>} : vector<12x12xf32>, vector<12x8xf32>, vector<12x8xf32> -> vector<12x8xf32>
    %228 = vector.extract_strided_slice %172 {offsets = [16, 0], sizes = [8, 32], strides = [1, 1]} : vector<32x32xf32> to vector<8x32xf32>
    %cst_90 = arith.constant dense<0.000000e+00> : vector<12x32xf32>
    %229 = tpu.matmul %227, %228, %cst_90 {dimension_numbers = #tpu.dot_dimension_numbers<[1], [0], [0], [1], [0, 0, 1, 1], [], []>} : vector<12x8xf32>, vector<8x32xf32>, vector<12x32xf32> -> vector<12x32xf32>
    %230 = arith.addf %211, %229 : vector<12x32xf32>
    %231 = vector.extract_strided_slice %168 {offsets = [0, 24], sizes = [12, 8], strides = [1, 1]} : vector<12x32xf32> to vector<12x8xf32>
    %232 = vector.extract_strided_slice %169 {offsets = [0, 24], sizes = [12, 8], strides = [1, 1]} : vector<12x32xf32> to vector<12x8xf32>
    %233 = vector.extract_strided_slice %170 {offsets = [0, 24], sizes = [12, 8], strides = [1, 1]} : vector<12x32xf32> to vector<12x8xf32>
    %cst_91 = arith.constant dense<0.000000e+00> : vector<12x12xf32>
    %234 = tpu.matmul %231, %232, %cst_91 {dimension_numbers = #tpu.dot_dimension_numbers<[1], [1], [0], [0], [0, 0, 1, 0], [], []>} : vector<12x8xf32>, vector<12x8xf32>, vector<12x12xf32> -> vector<12x12xf32>
    %235 = arith.addf %234, %6 : vector<12x12xf32>
    %cst_92 = arith.constant dense<0xFF800000> : vector<12xf32>
    %236 = vector.multi_reduction <maximumf>, %235, %cst_92 [1] : vector<12x12xf32> to vector<12xf32>
    %237 = vector.shape_cast %236 : vector<12xf32> to vector<12x1xf32>
    %238 = vector.broadcast %237 : vector<12x1xf32> to vector<12x12xf32>
    %239 = arith.subf %235, %238 : vector<12x12xf32>
    %240 = math.exp %239 : vector<12x12xf32>
    %cst_93 = arith.constant dense<0.000000e+00> : vector<12xf32>
    %241 = vector.multi_reduction <add>, %240, %cst_93 [1] : vector<12x12xf32> to vector<12xf32>
    %242 = vector.shape_cast %241 : vector<12xf32> to vector<12x1xf32>
    %243 = tpu.reciprocal %242 {approx = true} : vector<12x1xf32> -> vector<12x1xf32>
    %244 = vector.broadcast %243 : vector<12x1xf32> to vector<12x12xf32>
    %245 = arith.mulf %240, %244 : vector<12x12xf32>
    %cst_94 = arith.constant dense<0.000000e+00> : vector<12x8xf32>
    %246 = tpu.matmul %245, %233, %cst_94 {dimension_numbers = #tpu.dot_dimension_numbers<[1], [0], [0], [1], [0, 0, 1, 1], [], []>} : vector<12x12xf32>, vector<12x8xf32>, vector<12x8xf32> -> vector<12x8xf32>
    %247 = vector.extract_strided_slice %172 {offsets = [24, 0], sizes = [8, 32], strides = [1, 1]} : vector<32x32xf32> to vector<8x32xf32>
    %cst_95 = arith.constant dense<0.000000e+00> : vector<12x32xf32>
    %248 = tpu.matmul %246, %247, %cst_95 {dimension_numbers = #tpu.dot_dimension_numbers<[1], [0], [0], [1], [0, 0, 1, 1], [], []>} : vector<12x8xf32>, vector<8x32xf32>, vector<12x32xf32> -> vector<12x32xf32>
    %249 = arith.addf %230, %248 : vector<12x32xf32>
    %250 = arith.addf %143, %249 : vector<12x32xf32>
    %c1_96 = arith.constant 1 : index
    %c0_97 = arith.constant 0 : index
    %c0_98 = arith.constant 0 : index
    %251 = vector.load %arg9[%c1_96, %c0_97, %c0_98] : memref<2x1x32xf32, #tpu.memory_space<vmem>>, vector<1x1x32xf32>
    %252 = vector.shape_cast %251 : vector<1x1x32xf32> to vector<1x32xf32>
    %253 = arith.mulf %250, %250 : vector<12x32xf32>
    %cst_99 = arith.constant dense<0.000000e+00> : vector<12xf32>
    %254 = vector.multi_reduction <add>, %253, %cst_99 [1] : vector<12x32xf32> to vector<12xf32>
    %255 = vector.shape_cast %254 : vector<12xf32> to vector<12x1xf32>
    %cst_100 = arith.constant 3.200000e+01 : f32
    %256 = vector.broadcast %cst_100 : f32 to vector<12x1xf32>
    %257 = arith.divf %255, %256 : vector<12x1xf32>
    %cst_101 = arith.constant 9.99999974E-6 : f32
    %258 = vector.broadcast %cst_101 : f32 to vector<12x1xf32>
    %259 = arith.addf %257, %258 : vector<12x1xf32>
    %260 = math.rsqrt %259 : vector<12x1xf32>
    %261 = vector.broadcast %260 : vector<12x1xf32> to vector<12x32xf32>
    %262 = arith.mulf %250, %261 : vector<12x32xf32>
    %263 = vector.broadcast %252 : vector<1x32xf32> to vector<12x32xf32>
    %264 = arith.mulf %262, %263 : vector<12x32xf32>
    %c1_102 = arith.constant 1 : index
    %c0_103 = arith.constant 0 : index
    %c0_104 = arith.constant 0 : index
    %265 = vector.load %arg10[%c1_102, %c0_103, %c0_104] : memref<2x32x128xf32, #tpu.memory_space<vmem>>, vector<1x32x128xf32>
    %266 = vector.shape_cast %265 : vector<1x32x128xf32> to vector<32x128xf32>
    %cst_105 = arith.constant dense<0.000000e+00> : vector<12x128xf32>
    %267 = tpu.matmul %264, %266, %cst_105 {dimension_numbers = #tpu.dot_dimension_numbers<[1], [0], [0], [1], [0, 0, 1, 1], [], []>} : vector<12x32xf32>, vector<32x128xf32>, vector<12x128xf32> -> vector<12x128xf32>
    %268 = vector.extract_strided_slice %267 {offsets = [0, 0], sizes = [12, 64], strides = [1, 1]} : vector<12x128xf32> to vector<12x64xf32>
    %269 = vector.extract_strided_slice %267 {offsets = [0, 64], sizes = [12, 64], strides = [1, 1]} : vector<12x128xf32> to vector<12x64xf32>
    %270 = arith.negf %268 : vector<12x64xf32>
    %271 = math.exp %270 : vector<12x64xf32>
    %cst_106 = arith.constant 1.000000e+00 : f32
    %272 = vector.broadcast %cst_106 : f32 to vector<12x64xf32>
    %273 = arith.addf %272, %271 : vector<12x64xf32>
    %274 = arith.divf %272, %273 : vector<12x64xf32>
    %275 = arith.mulf %268, %274 : vector<12x64xf32>
    %276 = arith.mulf %275, %269 : vector<12x64xf32>
    %c1_107 = arith.constant 1 : index
    %c0_108 = arith.constant 0 : index
    %c0_109 = arith.constant 0 : index
    %277 = vector.load %arg11[%c1_107, %c0_108, %c0_109] : memref<2x64x32xf32, #tpu.memory_space<vmem>>, vector<1x64x32xf32>
    %278 = vector.shape_cast %277 : vector<1x64x32xf32> to vector<64x32xf32>
    %cst_110 = arith.constant dense<0.000000e+00> : vector<12x32xf32>
    %279 = tpu.matmul %276, %278, %cst_110 {dimension_numbers = #tpu.dot_dimension_numbers<[1], [0], [0], [1], [0, 0, 1, 1], [], []>} : vector<12x64xf32>, vector<64x32xf32>, vector<12x32xf32> -> vector<12x32xf32>
    %280 = arith.addf %250, %279 : vector<12x32xf32>
    %c0_111 = arith.constant 0 : index
    %c0_112 = arith.constant 0 : index
    %281 = vector.load %arg12[%c0_111, %c0_112] : memref<1x32xf32, #tpu.memory_space<vmem>>, vector<1x32xf32>
    %282 = arith.mulf %280, %280 : vector<12x32xf32>
    %cst_113 = arith.constant dense<0.000000e+00> : vector<12xf32>
    %283 = vector.multi_reduction <add>, %282, %cst_113 [1] : vector<12x32xf32> to vector<12xf32>
    %284 = vector.shape_cast %283 : vector<12xf32> to vector<12x1xf32>
    %cst_114 = arith.constant 3.200000e+01 : f32
    %285 = vector.broadcast %cst_114 : f32 to vector<12x1xf32>
    %286 = arith.divf %284, %285 : vector<12x1xf32>
    %cst_115 = arith.constant 9.99999974E-6 : f32
    %287 = vector.broadcast %cst_115 : f32 to vector<12x1xf32>
    %288 = arith.addf %286, %287 : vector<12x1xf32>
    %289 = math.rsqrt %288 : vector<12x1xf32>
    %290 = vector.broadcast %289 : vector<12x1xf32> to vector<12x32xf32>
    %291 = arith.mulf %280, %290 : vector<12x32xf32>
    %292 = vector.broadcast %281 : vector<1x32xf32> to vector<12x32xf32>
    %293 = arith.mulf %291, %292 : vector<12x32xf32>
    %c0_116 = arith.constant 0 : index
    %c0_117 = arith.constant 0 : index
    %294 = vector.load %arg13[%c0_116, %c0_117] : memref<32x128xf32, #tpu.memory_space<vmem>>, vector<32x128xf32>
    %cst_118 = arith.constant dense<0.000000e+00> : vector<12x128xf32>
    %295 = tpu.matmul %293, %294, %cst_118 {dimension_numbers = #tpu.dot_dimension_numbers<[1], [0], [0], [1], [0, 0, 1, 1], [], []>} : vector<12x32xf32>, vector<32x128xf32>, vector<12x128xf32> -> vector<12x128xf32>
    %c0_119 = arith.constant 0 : index
    %c0_120 = arith.constant 0 : index
    %c0_121 = arith.constant 0 : index
    %296 = vector.load %arg14[%c0_119, %c0_120, %c0_121] : memref<1x12x128xf32, #tpu.memory_space<vmem>>, vector<1x12x128xf32>
    %297 = vector.shape_cast %296 : vector<1x12x128xf32> to vector<12x128xf32>
    %298 = vector.shape_cast %295 : vector<12x128xf32> to vector<1x12x128xf32>
    tpu.vector_store %arg14[%c0_119, %c0_120, %c0_121], %298 {strides = array<i32>} : memref<1x12x128xf32, #tpu.memory_space<vmem>>, vector<1x12x128xf32>,
    return
  }
  func.func @transform_0(%arg0: i32) -> (i32, i32, i32) {
    %c0_i32 = arith.constant 0 : i32
    %c0_i32_0 = arith.constant 0 : i32
    %c0_i32_1 = arith.constant 0 : i32
    return %arg0, %c0_i32, %c0_i32_0 : i32, i32, i32
  }
  func.func @transform_1(%arg0: i32) -> (i32, i32) {
    %c0_i32 = arith.constant 0 : i32
    %c0_i32_0 = arith.constant 0 : i32
    %c0_i32_1 = arith.constant 0 : i32
    return %c0_i32, %c0_i32_0 : i32, i32
  }
  func.func @transform_2(%arg0: i32) -> (i32, i32) {
    %c0_i32 = arith.constant 0 : i32
    %c0_i32_0 = arith.constant 0 : i32
    %c0_i32_1 = arith.constant 0 : i32
    return %c0_i32, %c0_i32_0 : i32, i32
  }
  func.func @transform_3(%arg0: i32) -> (i32, i32) {
    %c0_i32 = arith.constant 0 : i32
    %c0_i32_0 = arith.constant 0 : i32
    %c0_i32_1 = arith.constant 0 : i32
    return %c0_i32, %c0_i32_0 : i32, i32
  }
  func.func @transform_4(%arg0: i32) -> (i32, i32, i32) {
    %c0_i32 = arith.constant 0 : i32
    %c0_i32_0 = arith.constant 0 : i32
    %c0_i32_1 = arith.constant 0 : i32
    return %arg0, %c0_i32, %c0_i32_0 : i32, i32, i32
  }
  func.func @transform_5(%arg0: i32) -> (i32, i32, i32) {
    %c0_i32 = arith.constant 0 : i32
    %c0_i32_0 = arith.constant 0 : i32
    %c0_i32_1 = arith.constant 0 : i32
    %c0_i32_2 = arith.constant 0 : i32
    return %c0_i32, %c0_i32_0, %c0_i32_1 : i32, i32, i32
  }
  func.func @transform_6(%arg0: i32) -> (i32, i32, i32) {
    %c0_i32 = arith.constant 0 : i32
    %c0_i32_0 = arith.constant 0 : i32
    %c0_i32_1 = arith.constant 0 : i32
    %c0_i32_2 = arith.constant 0 : i32
    return %c0_i32, %c0_i32_0, %c0_i32_1 : i32, i32, i32
  }
  func.func @transform_7(%arg0: i32) -> (i32, i32, i32) {
    %c0_i32 = arith.constant 0 : i32
    %c0_i32_0 = arith.constant 0 : i32
    %c0_i32_1 = arith.constant 0 : i32
    %c0_i32_2 = arith.constant 0 : i32
    return %c0_i32, %c0_i32_0, %c0_i32_1 : i32, i32, i32
  }
  func.func @transform_8(%arg0: i32) -> (i32, i32, i32) {
    %c0_i32 = arith.constant 0 : i32
    %c0_i32_0 = arith.constant 0 : i32
    %c0_i32_1 = arith.constant 0 : i32
    %c0_i32_2 = arith.constant 0 : i32
    return %c0_i32, %c0_i32_0, %c0_i32_1 : i32, i32, i32
  }
  func.func @transform_9(%arg0: i32) -> (i32, i32, i32) {
    %c0_i32 = arith.constant 0 : i32
    %c0_i32_0 = arith.constant 0 : i32
    %c0_i32_1 = arith.constant 0 : i32
    %c0_i32_2 = arith.constant 0 : i32
    return %c0_i32, %c0_i32_0, %c0_i32_1 : i32, i32, i32
  }
  func.func @transform_10(%arg0: i32) -> (i32, i32, i32) {
    %c0_i32 = arith.constant 0 : i32
    %c0_i32_0 = arith.constant 0 : i32
    %c0_i32_1 = arith.constant 0 : i32
    %c0_i32_2 = arith.constant 0 : i32
    return %c0_i32, %c0_i32_0, %c0_i32_1 : i32, i32, i32
  }
  func.func @transform_11(%arg0: i32) -> (i32, i32) {
    %c0_i32 = arith.constant 0 : i32
    %c0_i32_0 = arith.constant 0 : i32
    %c0_i32_1 = arith.constant 0 : i32
    return %c0_i32, %c0_i32_0 : i32, i32
  }
  func.func @transform_12(%arg0: i32) -> (i32, i32) {
    %c0_i32 = arith.constant 0 : i32
    %c0_i32_0 = arith.constant 0 : i32
    %c0_i32_1 = arith.constant 0 : i32
    return %c0_i32, %c0_i32_0 : i32, i32
  }
  func.func @transform_13(%arg0: i32) -> (i32, i32, i32) {
    %c0_i32 = arith.constant 0 : i32
    %c0_i32_0 = arith.constant 0 : i32
    %c0_i32_1 = arith.constant 0 : i32
    return %arg0, %c0_i32, %c0_i32_0 : i32, i32, i32
  }
}

</mosaic_0001>

<bundles_post_ra>
// kernel: multimodal_decoder_forward.1
= control target key start
LH: loop header
LB: loop body
LE: loop exit
PB: predicated region body
PF: predicated region fallthrough
CT: control target
= control target key end

     0   :  { %s4582_s25 = smov 0   ;;  %s5224_s0 = inlined_call_operand.vmem [shape: f32[2,12,32], index: 0, kind: input, shape index: {}]   ;;  %s5225_s1 = inlined_call_operand.vmem [shape: f32[12,64], index: 1, kind: input, shape index: {}]   ;;  %s5226_s2 = inlined_call_operand.vmem [shape: f32[12,64], index: 2, kind: input, shape index: {}]   ;;  %s5227_s3 = inlined_call_operand.vmem [shape: f32[64,64], index: 3, kind: input, shape index: {}]   ;;  %s5228_s4 = inlined_call_operand.vmem [shape: f32[2,12,12], index: 4, kind: input, shape index: {}]   ;;  %s5229_s5 = inlined_call_operand.vmem [shape: f32[2,1,32], index: 5, kind: input, shape index: {}]   ;;  %s5230_s6 = inlined_call_operand.vmem [shape: f32[2,32,96], index: 6, kind: input, shape index: {}]   ;;  %s5231_s7 = inlined_call_operand.vmem [shape: f32[2,32,32], index: 7, kind: input, shape index: {}]   ;;  %s5232_s8 = inlined_call_operand.vmem [shape: f32[2,1,32], index: 8, kind: input, shape index: {}]   ;;  %s5233_s9 = inlined_call_operand.vmem [shape: f32[2,32,128], index: 9, kind: input, shape index: {}]   ;;  %s5234_s10 = inlined_call_operand.vmem [shape: f32[2,64,32], index: 10, kind: input, shape index: {}]   ;;  %s5235_s11 = inlined_call_operand.vmem [shape: f32[1,32], index: 11, kind: input, shape index: {}]   ;;  %s5236_s12 = inlined_call_operand.vmem [shape: f32[32,128], index: 12, kind: input, shape index: {}]   ;;  %s5237_s13 = inlined_call_operand.vmem [shape: f32[2,12,128], index: 13, kind: output, shape index: {}]  }
   0x1 LB: > { %s3794_s26 = sadd.s32 4294967295, %s4499_s25   ;;  %p3798_p0 = scmp.ge.s32.totalorder %s4499_s25, 1  ;;  %s4499_s25 = sphi %s4582_s25, %s23_s25  }
   0x2   : > { %p397_p1 = scmp.lt.s32.totalorder %s4499_s25, 3 }
   0x4   : > { %p398_p2 = pnand %p3798_p0, %p397_p1 }
   0x5   : > { %p446_p3 = scmp.lt.s32.totalorder (!%p398_p2), %s3794_s26, 1  ;;  %s4501_s18 = smov (!%p398_p2), 88  }
   0x6   : > { %401 = sbr.rel (%p398_p2) target bundleno = 7271 (0x1c67), region = 72  ;;  %s4502_s19 = smov (!%p398_p2), 96  }
   0x7   : > { %s4503_s20 = smov (!%p398_p2), 120   ;;  %s4504_s24 = smov (!%p398_p2), 64  }
   0x8   : > { %s4506_s28 = smov (!%p398_p2), 80   ;;  %s5246_s29 = smov (!%p398_p2), 112  }
   0x9   : > { %s5242_s14 = smov (!%p398_p2), 104   ;;  %s5240_s22 = smov (!%p398_p2), 48  }
   0xa   : > { %s5238_s17 = smov (!%p398_p2), 40   ;;  %s5250_s16 = smov (!%p398_p2), 104  }
   0xb   : > { %s5254_s26 = smov (!%p446_p3, %s3794_s26), 1  ;;  %vm480_vm0 = vcmask 261120   ;;  %vm484_vm1 = vcmask 257024   ;;  %v508_v6 = vld [vmem:[%s5230_s6 + $0x18] sm:$0xff]  ;;  %v507_v7 = vld [vmem:[%s5230_s6 + $0x10] sm:$0xff]  ;;  %v506_v8 = vld [vmem:[%s5230_s6 + $0x8] sm:$0xff] }
   0xc   : > { %s4590_s27 = sshll.u32 %s5254_s26, 4  ;;  %4089 = vmatprep.subr.mxu0 %v508_v6  ;;  %v505_v9 = vld [vmem:[%s5230_s6] sm:$0xff]  ;;  %v4621_v10 = vld [vmem:[%s5227_s3 + $0x38] sm:$0xff]  ;;  %v4626_v11 = vld [vmem:[%s5227_s3 + $0x30] sm:$0xff]  ;;  %vm592_vm2 = vcmask 523264   ;;  %vm690_vm3 = vcmask 64512  }
   0xd   : > { %s450_s30 = scalar_lea.vmem %s5224_s0, %s4590_s27  ;;  %4090 = vmatpush3.msra.mxu0 %v508_v6  ;;  %4100 = vmatprep.subr.mxu1 %v4621_v10  ;;  %v4633_v12 = vld [vmem:[%s5227_s3 + $0x28] sm:$0xff]  ;;  %v4640_v13 = vld [vmem:[%s5227_s3 + $0x20] sm:$0xff]  ;;  %v4647_v14 = vld [vmem:[%s5227_s3 + $0x18] sm:$0xff]  ;;  %s4755_s23 = scalar_lea.vmem %s5228_s4, %s4590_s27  ;;  %vm780_vm4 = vcmask 93184   ;;  %vm776_vm5 = vcmask 97280   ;;  %vm811_vm6 = vcmask 1043456  }
   0xe   : > { %v4596_v0 = vld [vmem:[%s450_s30] sm:$0xff]  ;;  %v4600_v2 = vld [vmem:[%s450_s30 + $0x8] sm:$0xf]  ;;  %4091 = vmatprep.subr.mxu0 %v507_v7  ;;  %4101 = vmatpush3.msra.mxu1 %v4621_v10  ;;  %v4654_v15 = vld [vmem:[%s5227_s3 + $0x10] sm:$0xff]  ;;  %s4505_s26 = smov 56   ;;  %s5244_s30 = smov 72  }
   0xf   : > { %v478_v1 = vmul.f32 %v4596_v0, %v4596_v0  ;;  %v479_v3 = vmul.f32 %v4600_v2, %v4600_v2  ;;  %4092 = vmatpush3.msra.mxu0 %v507_v7  ;;  %4102 = vmatprep.subr.mxu1 %v4626_v11  ;;  %v3805_v23 = vld [vmem:[%s5229_s5] ss:$0 sm:$0xff]  ;;  %v4670_v29 = vld [vmem:[%s5227_s3 + $0x8] sm:$0xff]  ;;  %s460_s21 = scalar_lea.vmem %s5237_s13, %s4590_s27 }
  0x10   : > { %4093 = vmatprep.subr.mxu0 %v506_v8  ;;  %4103 = vmatpush3.msra.mxu1 %v4626_v11  ;;  %v4677_v30 = vld [vmem:[%s5227_s3] sm:$0xff]  ;;  %v4692_v33 = vld [vmem:[%s5225_s1 + $0x8] sm:$0xf] }
  0x11   : > { %v481_v4 = vsel %vm480_vm0, %v478_v1, 0.0  ;;  %v485_v5 = vsel %vm484_vm1, %v479_v3, 0.0  ;;  %4094 = vmatpush3.msra.mxu0 %v506_v8  ;;  %4104 = vmatprep.subr.mxu1 %v4633_v12  ;;  %v4697_v34 = vld [vmem:[%s5226_s2 + $0x8] sm:$0xf]  ;;  %v4702_v36 = vld [vmem:[%s5225_s1] sm:$0xff] }
  0x12   : > { %482 = vadd.xlane.f32.xlu0 %v481_v4  ;;  %4095 = vmatprep.subr.mxu0 %v505_v9  ;;  %v4707_v37 = vld [vmem:[%s5226_s2] sm:$0xff]  ;;  %v4758_v53 = vld [vmem:[%s4755_s23 + $0x8] sm:$0xf] }
  0x13   : > { %4096 = vmatpush3.msra.mxu0 %v505_v9  ;;  %4105 = vmatpush3.msra.mxu1 %v4633_v12  ;;  %v4761_v54 = vld [vmem:[%s4755_s23] sm:$0xff] }
  0x14   : > { %4106 = vmatprep.subr.mxu1 %v4640_v13 }
  0x15   : > { %4107 = vmatpush3.msra.mxu1 %v4640_v13 }
  0x16   : > { %486 = vadd.xlane.f32.xlu0 %v485_v5  ;;  %4108 = vmatprep.subr.mxu1 %v4647_v14 }
  0x17   : > { %4109 = vmatpush3.msra.mxu1 %v4647_v14 }
  0x18   : > { %4110 = vmatprep.subr.mxu1 %v4654_v15 }
  0x19   : > { %4111 = vmatpush3.msra.mxu1 %v4654_v15 }
  0x1a   : > { %4112 = vmatprep.subr.mxu1 %v4670_v29 }
  0x1b   : > { %4113 = vmatpush3.msra.mxu1 %v4670_v29 }
  0x1c   : > { %4114 = vmatprep.subr.mxu1 %v4677_v30 }
  0x1d   : > { %4115 = vmatpush3.msra.mxu1 %v4677_v30 }
  0x9b   : > { %v483_v16 = vpop.xlane.xlu0 %482 }
  0x9c   : > { %v489_v17 = vmul.f32 0.03125, %v483_v16 }
  0x9e   : > { %v491_v18 = vadd.f32 1e-05, %v489_v17 }
  0x9f   : > { %v487_v19 = vpop.xlane.xlu0 %486 }
  0xa0   : > { %4391 = vrsqrt.f32 %v491_v18  ;;  %v490_v20 = vmul.f32 0.03125, %v487_v19 }
  0xa2   : > { %v492_v21 = vadd.f32 1e-05, %v490_v20 }
  0xa4   : > { %4393 = vrsqrt.f32 %v492_v21 }
  0xad   : > { %v4392_v22 = vpop.eup %4391 }
  0xae   : > { %v495_v24 = vmul.f32 %v4392_v22, %v4596_v0 }
  0xb0   : > { %v503_v25 = vmul.f32 %v3805_v23, %v495_v24 }
  0xb1   : > { %v4394_v26 = vpop.eup %4393 }
  0xb2   : > { %v496_v27 = vmul.f32 %v4394_v26, %v4600_v2  ;;  %4097 = vmatprep.mubr.msk.f32.mxu0 %vm480_vm0, %v503_v25 }
  0xb4   : > { %v504_v28 = vmul.f32 %v3805_v23, %v496_v27 }
  0xb6   : > { %4098 = vmatmul.mubr.msk.f32.vlgmr.msra.gmra.mxu0 %vm480_vm0, %v504_v28 }
 0x176   : > { %v4681_v31 = vpop.f32.mrf.mxu0 }
 0x177   : > { %v591_v38 = vmul.f32 %v4681_v31, %v4692_v33 }
 0x178   : > { %v4683_v32 = vpop.f32.mrf.mxu0 }
 0x179   : > { %4116 = vmatprep.mubr.msk.f32.mxu1 %vm592_vm2, %v4683_v32  ;;  %v590_v42 = vmul.f32 %v4683_v32, %v4702_v36 }
 0x17a   : > { %4117 = vmatmul.mubr.msk.f32.vlgmr.msra.gmra.mxu1 %vm592_vm2, %v4681_v31 }
 0x23a   : > { %v4118_v35 = vpop.f32.mrf.mxu1 }
 0x23b   : > { %v675_v39 = vmul.f32 %v4118_v35, %v4697_v34 }
 0x23c   : > { %v665_v40 = vpop.f32.mrf.mxu1 }
 0x23d   : > { %v4712_v41 = vadd.f32 %v675_v39, %v591_v38  ;;  %v674_v43 = vmul.f32 %v665_v40, %v4707_v37 }
 0x23f   : > { %v4717_v44 = vadd.f32 %v674_v43, %v590_v42  ;;  %895 = vrot.lane.b32.xlu0 %v4712_v41, %s4501_s18  ;;  %688 = vrot.lane.b32.xlu1 %v4712_v41, %s4502_s19  ;;  %v4735_v46 = vmul.f32 0.35355338, %v4712_v41 }
 0x241   : > { %v4724_v45 = vmul.f32 0.35355338, %v4717_v44 }
 0x243   : > { %686 = vrot.lane.b32.xlu1 %v4717_v44, %s4502_s19  ;;  %4123 = vmatprep.mubr.msk.f32.mxu0 %vm690_vm3, %v4724_v45 }
 0x247   : > { %893 = vrot.lane.b32.xlu1 %v4717_v44, %s4501_s18 }
 0x24b   : > { %889 = vrot.lane.b32.xlu1 %v4724_v45, %s4503_s20 }
 0x24f   : > { %891 = vrot.lane.b32.xlu1 %v4735_v46, %s4503_s20 }
 0x2b1   : > { %v896_v47 = vpop.permute.xlu0 %895  ;;  %v689_v48 = vpop.permute.xlu1 %688 }
 0x2b2   : > { %4119 = vmatprep.subr.msk.mxu0 %vm690_vm3, %v689_v48  ;;  %4133 = vmatprep.subr.msk.mxu1 %vm690_vm3, %v896_v47 }
 0x2b3   : > { %4120 = vmatpush3.xpose.msk.msra.mxu0 %vm690_vm3, %v689_v48  ;;  %4134 = vmatpush3.xpose.msk.msra.mxu1 %vm690_vm3, %v896_v47 }
 0x2b5   : > { %v687_v49 = vpop.permute.xlu1 %686 }
 0x2b6   : > { %4121 = vmatprep.subr.msk.mxu0 %vm690_vm3, %v687_v49 }
 0x2b7   : > { %4122 = vmatpush3.xpose.msk.msra.mxu0 %vm690_vm3, %v687_v49 }
 0x2b9   : > { %v894_v50 = vpop.permute.xlu1 %893 }
 0x2ba   : > { %4124 = vmatmul.mubr.msk.f32.vlgmr.msra.gmra.mxu0 %vm690_vm3, %v4735_v46  ;;  %4135 = vmatprep.subr.msk.mxu1 %vm690_vm3, %v894_v50 }
 0x2bb   : > { %4136 = vmatpush3.xpose.msk.msra.mxu1 %vm690_vm3, %v894_v50 }
 0x2bd   : > { %v890_v51 = vpop.permute.xlu1 %889 }
 0x2be   : > { %4137 = vmatprep.mubr.msk.f32.mxu1 %vm690_vm3, %v890_v51 }
 0x2c1   : > { %v892_v52 = vpop.permute.xlu1 %891 }
 0x2c2   : > { %4138 = vmatmul.mubr.msk.f32.vlgmr.msra.gmra.mxu1 %vm690_vm3, %v892_v52 }
 0x37a   : > { %v4125_v55 = vpop.f32.mrf.mxu0 }
 0x37b   : > { %v773_v56 = vadd.f32 %v4125_v55, %v4758_v53 }
 0x37c   : > { %v767_v57 = vpop.f32.mrf.mxu0 }
 0x37d   : > { %v768_v58 = vadd.f32 %v767_v57, %v4761_v54  ;;  %v781_v59 = vsel %vm780_vm4, %v773_v56, -inf }
 0x37e   : > { %782 = vmax.xlane.f32.xlu0 %v781_v59  ;;  %v680_v59 = vld [vmem:[%s5231_s7] sm:$0xff] }
 0x37f   : > { %v777_v60 = vsel %vm776_vm5, %v768_v58, -inf  ;;  %4152 = vmatprep.subr.mxu1 %v680_v59 }
 0x380   : > { %778 = vmax.xlane.f32.xlu1 %v777_v60  ;;  %4153 = vmatpush3.msra.mxu1 %v680_v59 }
 0x382   : > { %v4139_v61 = vpop.f32.mrf.mxu1 }
 0x383   : > { %v977_v1 = vadd.f32 %v4139_v61, %v4758_v53 }
 0x384   : > { %v971_v62 = vpop.f32.mrf.mxu1 }
 0x385   : > { %v972_v63 = vadd.f32 %v971_v62, %v4761_v54  ;;  %v983_v4 = vsel %vm780_vm4, %v977_v1, -inf }
 0x387   : > { %v980_v3 = vsel %vm776_vm5, %v972_v63, -inf }
 0x388   : > { %981 = vmax.xlane.f32.xlu1 %v980_v3 }
 0x38c   : > { %984 = vmax.xlane.f32.xlu1 %v983_v4 }
 0x394   : > { %802 = vrot.lane.b32.xlu0 %v4681_v31, %s4504_s24 }
 0x39d   : > { %800 = vrot.lane.b32.xlu1 %v4683_v32, %s4504_s24 }
 0x407   : > { %v783_v5 = vpop.xlane.xlu0 %782 }
 0x408   : > { %v785_v6 = vsub.f32 %v773_v56, %v783_v5 }
 0x409   : > { %v779_v7 = vpop.xlane.xlu1 %778 }
 0x40a   : > { %v788_v8 = vmul.f32 1.442695, %v785_v6  ;;  %v784_v9 = vsub.f32 %v768_v58, %v779_v7 }
 0x40b   : > { %v803_v16 = vpop.permute.xlu0 %802 }
 0x40c   : > { %4395 = vpow2.f32 %v788_v8  ;;  %v786_v17 = vmul.f32 1.442695, %v784_v9  ;;  %4126 = vmatprep.subr.msk.mxu0 %vm811_vm6, %v803_v16 }
 0x40d   : > { %4127 = vmatpush3.msk.msra.mxu0 %vm811_vm6, %v803_v16 }
 0x40e   : > { %4397 = vpow2.f32 %v786_v17 }
 0x411   : > { %v982_v18 = vpop.xlane.xlu1 %981 }
 0x412   : > { %v986_v19 = vsub.f32 %v972_v63, %v982_v18 }
 0x414   : > { %v988_v20 = vmul.f32 1.442695, %v986_v19 }
 0x415   : > { %v985_v21 = vpop.xlane.xlu1 %984 }
 0x416   : > { %4399 = vpow2.f32 %v988_v20  ;;  %v987_v22 = vsub.f32 %v977_v1, %v985_v21 }
 0x418   : > { %v990_v23 = vmul.f32 1.442695, %v987_v22 }
 0x419   : > { %v4396_v24 = vpop.eup %4395  ;;  %v801_v25 = vpop.permute.xlu1 %800 }
 0x41a   : > { %4401 = vpow2.f32 %v990_v23  ;;  %4128 = vmatprep.subr.mxu0 %v801_v25  ;;  %v793_v26 = vsel %vm780_vm4, %v4396_v24, 0.0 }
 0x41b   : > { %v4398_v27 = vpop.eup %4397  ;;  %794 = vadd.xlane.f32.xlu1 %v793_v26  ;;  %4129 = vmatpush3.msra.mxu0 %v801_v25 }
 0x41c   : > { %v790_v28 = vsel %vm776_vm5, %v4398_v27, 0.0 }
 0x41d   : > { %791 = vadd.xlane.f32.xlu0 %v790_v28 }
 0x423   : > { %v4400_v35 = vpop.eup %4399 }
 0x424   : > { %v992_v38 = vsel %vm776_vm5, %v4400_v35, 0.0 }
 0x425   : > { %993 = vadd.xlane.f32.xlu0 %v992_v38 }
 0x427   : > { %v4402_v39 = vpop.eup %4401 }
 0x428   : > { %v995_v40 = vsel %vm780_vm4, %v4402_v39, 0.0 }
 0x429   : > { %996 = vadd.xlane.f32.xlu1 %v995_v40 }
 0x43a   : > { %1004 = vrot.lane.b32.xlu1 %v4681_v31, %s4505_s26 }
 0x43b   : > { %1002 = vrot.lane.b32.xlu0 %v4683_v32, %s4505_s26 }
 0x43e   : > { %1258 = vrot.lane.b32.xlu1 %v4712_v41, %s4506_s28 }
 0x43f   : > { %1256 = vrot.lane.b32.xlu0 %v4717_v44, %s4506_s28 }
 0x442   : > { %1252 = vrot.lane.b32.xlu1 %v4724_v45, %s5246_s29 }
 0x443   : > { %1254 = vrot.lane.b32.xlu0 %v4735_v46, %s5246_s29 }
 0x446   : > { %1542 = vrot.lane.b32.xlu1 %v4712_v41, %s5244_s30 }
 0x447   : > { %1540 = vrot.lane.b32.xlu0 %v4717_v44, %s5244_s30 }
 0x44a   : > { %1536 = vrot.lane.b32.xlu1 %v4724_v45, %s5242_s14 }
 0x44b   : > { %1538 = vrot.lane.b32.xlu0 %v4735_v46, %s5242_s14  ;;  %v681_v46 = vld [vmem:[%s5231_s7 + $0x8] sm:$0xff]  ;;  %s5252_s14 = smov 40  }
 0x4a4   : > { %v795_v42 = vpop.xlane.xlu1 %794 }
 0x4a5   : > { %4403 = vrcp.f32 %v795_v42 }
 0x4a6   : > { %v792_v43 = vpop.xlane.xlu0 %791 }
 0x4a7   : > { %4405 = vrcp.f32 %v792_v43 }
 0x4ae   : > { %v994_v47 = vpop.xlane.xlu0 %993 }
 0x4af   : > { %4407 = vrcp.f32 %v994_v47 }
 0x4b2   : > { %v997_v48 = vpop.xlane.xlu1 %996  ;;  %v4404_v49 = vpop.eup %4403 }
 0x4b3   : > { %4409 = vrcp.f32 %v997_v48  ;;  %v799_v44 = vmul.f32 %v4404_v49, %v4396_v24  ;;  %v1003_v45 = vpop.permute.xlu0 %1002 }
 0x4b4   : > { %v4406_v41 = vpop.eup %4405 }
 0x4b5   : > { %v798_v50 = vmul.f32 %v4406_v41, %v4398_v27 }
 0x4b6   : > { %v1005_v51 = vpop.permute.xlu1 %1004 }
 0x4b7   : > { %4130 = vmatprep.mubr.msk.f32.mxu0 %vm776_vm5, %v798_v50  ;;  %4140 = vmatprep.subr.msk.mxu0 %vm811_vm6, %v1005_v51  ;;  %v1257_v1 = vpop.permute.xlu0 %1256 }
 0x4b8   : > { %4131 = vmatmul.mubr.msk.f32.vlgmr.msra.gmra.mxu0 %vm776_vm5, %v799_v44 }
 0x4b9   : > { %4141 = vmatpush3.msk.msra.mxu0 %vm811_vm6, %v1005_v51 }
 0x4ba   : > { %4142 = vmatprep.subr.mxu0 %v1003_v45  ;;  %v1259_v58 = vpop.permute.xlu1 %1258 }
 0x4bb   : > { %4143 = vmatpush3.msra.mxu0 %v1003_v45  ;;  %v1255_v5 = vpop.permute.xlu0 %1254 }
 0x4bc   : > { %v4408_v52 = vpop.eup %4407  ;;  %4147 = vmatprep.subr.mxu0 %v681_v46 }
 0x4bd   : > { %v1000_v55 = vmul.f32 %v4408_v52, %v4400_v35 }
 0x4be   : > { %v1253_v62 = vpop.permute.xlu1 %1252 }
 0x4bf   : > { %4144 = vmatprep.mubr.msk.f32.mxu0 %vm776_vm5, %v1000_v55  ;;  %v1541_v7 = vpop.permute.xlu0 %1540 }
 0x4c0   : > { %v4410_v56 = vpop.eup %4409 }
 0x4c1   : > { %v1001_v57 = vmul.f32 %v4410_v56, %v4402_v39 }
 0x4c2   : > { %v1543_v4 = vpop.permute.xlu1 %1542 }
 0x4c3   : > { %4145 = vmatmul.mubr.msk.f32.vlgmr.msra.gmra.mxu0 %vm776_vm5, %v1001_v57  ;;  %v1539_v8 = vpop.permute.xlu0 %1538 }
 0x4c4   : > { %4148 = vmatpush3.msra.mxu0 %v681_v46 }
 0x4c5   : > { %4157 = vmatprep.subr.msk.mxu0 %vm690_vm3, %v1259_v58 }
 0x4c6   : > { %v1537_v6 = vpop.permute.xlu1 %1536 }
 0x578   : > { %v4132_v60 = vpop.f32.mrf.mxu0 }
 0x57a   : > { %v880_v61 = vpop.f32.mrf.mxu0 }
 0x57b   : > { %4154 = vmatprep.mubr.msk.f32.mxu1 %vm690_vm3, %v880_v61 }
 0x57c   : > { %4155 = vmatmul.mubr.msk.f32.vlgmr.msra.gmra.mxu1 %vm690_vm3, %v4132_v60 }
 0x583   : > { %v4146_v63 = vpop.f32.mrf.mxu0 }
 0x585   : > { %v1081_v3 = vpop.f32.mrf.mxu0 }
 0x586   : > { %4149 = vmatprep.mubr.msk.f32.mxu0 %vm690_vm3, %v1081_v3 }
 0x587   : > { %4150 = vmatmul.mubr.msk.f32.vlgmr.msra.gmra.mxu0 %vm690_vm3, %v4146_v63 }
 0x588   : > { %4158 = vmatpush3.xpose.msk.msra.mxu0 %vm690_vm3, %v1259_v58  ;;  %4161 = vmatprep.mubr.msk.f32.mxu0 %vm690_vm3, %v1253_v62 }
 0x589   : > { %4159 = vmatprep.subr.msk.mxu0 %vm690_vm3, %v1257_v1 }
 0x58c   : > { %4160 = vmatpush3.xpose.msk.msra.mxu0 %vm690_vm3, %v1257_v1 }
 0x58d   : > { %4176 = vmatprep.subr.msk.mxu0 %vm690_vm3, %v1543_v4 }
 0x58f   : > { %4162 = vmatmul.mubr.msk.f32.vlgmr.msra.gmra.mxu0 %vm690_vm3, %v1255_v5 }
 0x590   : > { %4177 = vmatpush3.xpose.msk.msra.mxu0 %vm690_vm3, %v1543_v4  ;;  %4180 = vmatprep.mubr.msk.f32.mxu0 %vm690_vm3, %v1537_v6 }
 0x591   : > { %4178 = vmatprep.subr.msk.mxu0 %vm690_vm3, %v1541_v7 }
 0x594   : > { %4179 = vmatpush3.xpose.msk.msra.mxu0 %vm690_vm3, %v1541_v7  ;;  %v682_v7 = vld [vmem:[%s5231_s7 + $0x10] sm:$0xff] }
 0x597   : > { %4181 = vmatmul.mubr.msk.f32.vlgmr.msra.gmra.mxu0 %vm690_vm3, %v1539_v8 }
 0x63c   : > { %v4156_v9 = vpop.f32.mrf.mxu1 }
 0x63e   : > { %v1243_v8 = vpop.f32.mrf.mxu1 }
 0x647   : > { %v4151_v16 = vpop.f32.mrf.mxu0 }
 0x648   : > { %v4829_v17 = vadd.f32 %v4156_v9, %v4151_v16 }
 0x649   : > { %v4831_v18 = vpop.f32.mrf.mxu0 }
 0x64f   : > { %v4163_v19 = vpop.f32.mrf.mxu0 }
 0x650   : > { %v1340_v20 = vadd.f32 %v4163_v19, %v4758_v53 }
 0x651   : > { %v1334_v21 = vpop.f32.mrf.mxu0 }
 0x652   : > { %v1335_v22 = vadd.f32 %v1334_v21, %v4761_v54  ;;  %v1346_v23 = vsel %vm780_vm4, %v1340_v20, -inf }
 0x653   : > { %1347 = vmax.xlane.f32.xlu0 %v1346_v23 }
 0x654   : > { %v1343_v24 = vsel %vm776_vm5, %v1335_v22, -inf }
 0x655   : > { %1344 = vmax.xlane.f32.xlu1 %v1343_v24 }
 0x657   : > { %v4182_v47 = vpop.f32.mrf.mxu0 }
 0x658   : > { %v1624_v41 = vadd.f32 %v4182_v47, %v4758_v53 }
 0x659   : > { %v1618_v48 = vpop.f32.mrf.mxu0 }
 0x65a   : > { %v1619_v49 = vadd.f32 %v1618_v48, %v4761_v54  ;;  %v1630_v51 = vsel %vm780_vm4, %v1624_v41, -inf }
 0x65c   : > { %v1627_v50 = vsel %vm776_vm5, %v1619_v49, -inf }
 0x6dc   : > { %v1348_v25 = vpop.xlane.xlu0 %1347 }
 0x6dd   : > { %v1350_v26 = vsub.f32 %v1340_v20, %v1348_v25  ;;  %v683_v25 = vld [vmem:[%s5231_s7 + $0x18] sm:$0xff] }
 0x6de   : > { %v1345_v27 = vpop.xlane.xlu1 %1344 }
 0x6df   : > { %v1353_v28 = vmul.f32 1.442695, %v1350_v26  ;;  %v1349_v35 = vsub.f32 %v1335_v22, %v1345_v27  ;;  %v1244_v27 = vadd.f32 %v1243_v8, %v4831_v18  ;;  %v1959_v8 = vld [vmem:[%s5234_s10 + $0x18] sm:$0xff] }
 0x6e1   : > { %4411 = vpow2.f32 %v1353_v28  ;;  %v1351_v38 = vmul.f32 1.442695, %v1349_v35 }
 0x6e3   : > { %4413 = vpow2.f32 %v1351_v38 }
 0x6ee   : > { %v4412_v39 = vpop.eup %4411 }
 0x6ef   : > { %v1358_v40 = vsel %vm780_vm4, %v4412_v39, 0.0 }
 0x6f0   : > { %v4414_v42 = vpop.eup %4413  ;;  %1359 = vadd.xlane.f32.xlu1 %v1358_v40 }
 0x6f1   : > { %v1355_v43 = vsel %vm776_vm5, %v4414_v42, 0.0 }
 0x6f2   : > { %1356 = vadd.xlane.f32.xlu0 %v1355_v43 }
 0x701   : > { %1365 = vrot.lane.b32.xlu1 %v4683_v32, %s5240_s22 }
 0x708   : > { %1367 = vrot.lane.b32.xlu0 %v4681_v31, %s5240_s22 }
 0x725   : > { %1628 = vmax.xlane.f32.xlu1 %v1627_v50 }
 0x727   : > { %1631 = vmax.xlane.f32.xlu0 %v1630_v51 }
 0x779   : > { %v1360_v44 = vpop.xlane.xlu1 %1359 }
 0x77a   : > { %4415 = vrcp.f32 %v1360_v44  ;;  %v1848_v44 = vld [vmem:[%s5233_s9 + $0x8] sm:$0xff] }
 0x77b   : > { %v1357_v45 = vpop.xlane.xlu0 %1356 }
 0x77c   : > { %4417 = vrcp.f32 %v1357_v45  ;;  %v1847_v45 = vld [vmem:[%s5233_s9] sm:$0xff] }
 0x77d   : > { %v1366_v52 = vpop.permute.xlu1 %1365 }
 0x77f   : > { %v1368_v46 = vpop.permute.xlu0 %1367 }
 0x780   : > { %4164 = vmatprep.subr.msk.mxu1 %vm811_vm6, %v1368_v46 }
 0x781   : > { %4165 = vmatpush3.msk.msra.mxu1 %vm811_vm6, %v1368_v46 }
 0x782   : > { %4166 = vmatprep.subr.mxu1 %v1366_v52 }
 0x783   : > { %4167 = vmatpush3.msra.mxu1 %v1366_v52 }
 0x784   : > { %4171 = vmatprep.subr.mxu1 %v682_v7 }
 0x787   : > { %v4416_v55 = vpop.eup %4415 }
 0x788   : > { %v1364_v58 = vmul.f32 %v4416_v55, %v4412_v39 }
 0x789   : > { %v4418_v56 = vpop.eup %4417 }
 0x78a   : > { %v1363_v57 = vmul.f32 %v4418_v56, %v4414_v42 }
 0x78c   : > { %4168 = vmatprep.mubr.msk.f32.mxu1 %vm776_vm5, %v1363_v57 }
 0x78d   : > { %4169 = vmatmul.mubr.msk.f32.vlgmr.msra.gmra.mxu1 %vm776_vm5, %v1364_v58 }
 0x78e   : > { %4172 = vmatpush3.msra.mxu1 %v682_v7  ;;  %v1960_v7 = vld [vmem:[%s5234_s10 + $0x20] sm:$0xff] }
 0x7ae   : > { %v1629_v59 = vpop.xlane.xlu1 %1628 }
 0x7af   : > { %v1633_v60 = vsub.f32 %v1619_v49, %v1629_v59 }
 0x7b0   : > { %v1632_v61 = vpop.xlane.xlu0 %1631 }
 0x7b1   : > { %v1635_v62 = vmul.f32 1.442695, %v1633_v60  ;;  %v1634_v63 = vsub.f32 %v1624_v41, %v1632_v61 }
 0x7b3   : > { %4419 = vpow2.f32 %v1635_v62  ;;  %v1637_v1 = vmul.f32 1.442695, %v1634_v63  ;;  %v3846_v62 = vld [vmem:[%s5232_s8] ss:$0 sm:$0xff] }
 0x7b5   : > { %4421 = vpow2.f32 %v1637_v1 }
 0x7c0   : > { %v4420_v3 = vpop.eup %4419 }
 0x7c1   : > { %v1639_v4 = vsel %vm776_vm5, %v4420_v3, 0.0 }
 0x7c2   : > { %v4422_v5 = vpop.eup %4421  ;;  %1640 = vadd.xlane.f32.xlu0 %v1639_v4  ;;  %v1963_v4 = vld [vmem:[%s5234_s10 + $0x38] sm:$0xff] }
 0x7c3   : > { %v1642_v6 = vsel %vm780_vm4, %v4422_v5, 0.0 }
 0x7c4   : > { %1643 = vadd.xlane.f32.xlu1 %v1642_v6  ;;  %v1961_v6 = vld [vmem:[%s5234_s10 + $0x28] sm:$0xff] }
 0x7d5   : > { %1649 = vrot.lane.b32.xlu1 %v4683_v32, %s5238_s17 }
 0x7d8   : > { %1651 = vrot.lane.b32.xlu0 %v4681_v31, %s5238_s17  ;;  %s5249_s17 = smov 72  }
 0x84b   : > { %v1641_v9 = vpop.xlane.xlu0 %1640 }
 0x84c   : > { %4423 = vrcp.f32 %v1641_v9  ;;  %v1958_v9 = vld [vmem:[%s5234_s10 + $0x10] sm:$0xff] }
 0x84d   : > { %v4170_v16 = vpop.f32.mrf.mxu1  ;;  %v1644_v19 = vpop.xlane.xlu1 %1643 }
 0x84e   : > { %4425 = vrcp.f32 %v1644_v19  ;;  %v1956_v19 = vld [vmem:[%s5234_s10] sm:$0xff] }
 0x84f   : > { %v1444_v20 = vpop.f32.mrf.mxu1  ;;  %v1652_v21 = vpop.permute.xlu0 %1651 }
 0x850   : > { %4173 = vmatprep.mubr.msk.f32.mxu1 %vm690_vm3, %v1444_v20  ;;  %4183 = vmatprep.subr.msk.mxu1 %vm811_vm6, %v1652_v21 }
 0x851   : > { %4174 = vmatmul.mubr.msk.f32.vlgmr.msra.gmra.mxu1 %vm690_vm3, %v4170_v16  ;;  %v1650_v22 = vpop.permute.xlu1 %1649  ;;  %v1957_v16 = vld [vmem:[%s5234_s10 + $0x8] sm:$0xff] }
 0x852   : > { %4184 = vmatpush3.msk.msra.mxu1 %vm811_vm6, %v1652_v21 }
 0x853   : > { %4185 = vmatprep.subr.mxu1 %v1650_v22 }
 0x854   : > { %4186 = vmatpush3.msra.mxu1 %v1650_v22 }
 0x855   : > { %4190 = vmatprep.subr.mxu1 %v683_v25 }
 0x859   : > { %v4424_v31 = vpop.eup %4423 }
 0x85a   : > { %v1647_v32 = vmul.f32 %v4424_v31, %v4420_v3 }
 0x85b   : > { %v4426_v23 = vpop.eup %4425 }
 0x85c   : > { %4187 = vmatprep.mubr.msk.f32.mxu1 %vm776_vm5, %v1647_v32  ;;  %v1648_v24 = vmul.f32 %v4426_v23, %v4422_v5  ;;  %v1962_v5 = vld [vmem:[%s5234_s10 + $0x30] sm:$0xff] }
 0x85e   : > { %4188 = vmatmul.mubr.msk.f32.vlgmr.msra.gmra.mxu1 %vm776_vm5, %v1648_v24 }
 0x85f   : > { %4191 = vmatpush3.msra.mxu1 %v683_v25 }
 0x860   : > { %4206 = vmatprep.subr.mxu1 %v1963_v4 }
 0x911   : > { %v4175_v26 = vpop.f32.mrf.mxu1 }
 0x912   : > { %v1535_v28 = vadd.f32 %v4175_v26, %v4829_v17 }
 0x913   : > { %v1525_v35 = vpop.f32.mrf.mxu1 }
 0x914   : > { %v1534_v38 = vadd.f32 %v1525_v35, %v1244_v27 }
 0x91e   : > { %v4189_v39 = vpop.f32.mrf.mxu1 }
 0x920   : > { %v1728_v40 = vpop.f32.mrf.mxu1 }
 0x921   : > { %4192 = vmatprep.mubr.msk.f32.mxu1 %vm690_vm3, %v1728_v40 }
 0x922   : > { %4193 = vmatmul.mubr.msk.f32.vlgmr.msra.gmra.mxu1 %vm690_vm3, %v4189_v39 }
 0x923   : > { %4207 = vmatpush3.msra.mxu1 %v1963_v4 }
 0x924   : > { %4208 = vmatprep.subr.mxu1 %v1962_v5 }
 0x925   : > { %4209 = vmatpush3.msra.mxu1 %v1962_v5 }
 0x926   : > { %4210 = vmatprep.subr.mxu1 %v1961_v6 }
 0x927   : > { %4211 = vmatpush3.msra.mxu1 %v1961_v6 }
 0x928   : > { %4212 = vmatprep.subr.mxu1 %v1960_v7 }
 0x929   : > { %4213 = vmatpush3.msra.mxu1 %v1960_v7 }
 0x92a   : > { %4214 = vmatprep.subr.mxu1 %v1959_v8 }
 0x92b   : > { %4215 = vmatpush3.msra.mxu1 %v1959_v8 }
 0x92c   : > { %4216 = vmatprep.subr.mxu1 %v1958_v9 }
 0x92d   : > { %4217 = vmatpush3.msra.mxu1 %v1958_v9 }
 0x92e   : > { %4218 = vmatprep.subr.mxu1 %v1957_v16 }
 0x92f   : > { %4219 = vmatpush3.msra.mxu1 %v1957_v16 }
 0x930   : > { %4220 = vmatprep.subr.mxu1 %v1956_v19 }
 0x931   : > { %4221 = vmatpush3.msra.mxu1 %v1956_v19 }
 0x9e2   : > { %v4194_v42 = vpop.f32.mrf.mxu1 }
 0x9e3   : > { %v1819_v43 = vadd.f32 %v4194_v42, %v1535_v28 }
 0x9e4   : > { %v1809_v47 = vpop.f32.mrf.mxu1 }
 0x9e5   : > { %v4874_v48 = vadd.f32 %v1819_v43, %v4600_v2  ;;  %v1818_v49 = vadd.f32 %v1809_v47, %v1534_v38  ;;  %v1850_v2 = vld [vmem:[%s5233_s9 + $0x18] sm:$0xff] }
 0x9e6   : > { %4195 = vmatprep.subr.mxu0 %v1850_v2 }
 0x9e7   : > { %v4877_v41 = vadd.f32 %v1818_v49, %v4596_v0  ;;  %v1824_v17 = vmul.f32 %v4874_v48, %v4874_v48  ;;  %v1849_v0 = vld [vmem:[%s5233_s9 + $0x10] sm:$0xff]  ;;  %4196 = vmatpush3.msra.mxu0 %v1850_v2 }
 0x9e8   : > { %4197 = vmatprep.subr.mxu0 %v1849_v0 }
 0x9e9   : > { %v1828_v18 = vsel %vm484_vm1, %v1824_v17, 0.0  ;;  %v1823_v50 = vmul.f32 %v4877_v41, %v4877_v41  ;;  %4198 = vmatpush3.msra.mxu0 %v1849_v0  ;;  %v3856_v0 = vld [vmem:[%s5230_s6 + $0x28] sm:$0xff] }
 0x9ea   : > { %1829 = vadd.xlane.f32.xlu0 %v1828_v18  ;;  %4199 = vmatprep.subr.mxu0 %v1848_v44 }
 0x9eb   : > { %v1825_v51 = vsel %vm480_vm0, %v1823_v50, 0.0  ;;  %4200 = vmatpush3.msra.mxu0 %v1848_v44  ;;  %v3855_v44 = vld [vmem:[%s5230_s6 + $0x20] sm:$0xff] }
 0x9ec   : > { %1826 = vadd.xlane.f32.xlu1 %v1825_v51  ;;  %4201 = vmatprep.subr.mxu0 %v1847_v45 }
 0x9ed   : > { %4202 = vmatpush3.msra.mxu0 %v1847_v45 }
 0xa73   : > { %v1830_v46 = vpop.xlane.xlu0 %1829 }
 0xa74   : > { %v1832_v52 = vmul.f32 0.03125, %v1830_v46 }
 0xa75   : > { %v1827_v55 = vpop.xlane.xlu1 %1826 }
 0xa76   : > { %v1834_v56 = vadd.f32 1e-05, %v1832_v52  ;;  %v1831_v57 = vmul.f32 0.03125, %v1827_v55 }
 0xa78   : > { %4427 = vrsqrt.f32 %v1834_v56  ;;  %v1833_v58 = vadd.f32 1e-05, %v1831_v57 }
 0xa7a   : > { %4429 = vrsqrt.f32 %v1833_v58 }
 0xa85   : > { %v4428_v59 = vpop.eup %4427 }
 0xa86   : > { %v1838_v61 = vmul.f32 %v4428_v59, %v4874_v48 }
 0xa87   : > { %v4430_v60 = vpop.eup %4429 }
 0xa88   : > { %v1837_v63 = vmul.f32 %v4430_v60, %v4877_v41  ;;  %v1846_v3 = vmul.f32 %v3846_v62, %v1838_v61  ;;  %v3854_v61 = vld [vmem:[%s5229_s5 + $0x1] ss:$0 sm:$0xff] }
 0xa8a   : > { %v1845_v1 = vmul.f32 %v3846_v62, %v1837_v63 }
 0xa8c   : > { %4203 = vmatprep.mubr.msk.f32.mxu0 %vm480_vm0, %v1845_v1 }
 0xa8d   : > { %4204 = vmatmul.mubr.msk.f32.vlgmr.msra.gmra.mxu0 %vm480_vm0, %v1846_v3 }
 0xb4d   : > { %v4205_v20 = vpop.f32.mrf.mxu0 }
 0xb4e   : > { %1950 = vrot.lane.b32.xlu1 %v4205_v20, %s4504_s24  ;;  %v3850_v31 = vmul.f32 -1.442695, %v4205_v20 }
 0xb4f   : > { %v1923_v21 = vpop.f32.mrf.mxu0 }
 0xb50   : > { %1948 = vrot.lane.b32.xlu0 %v1923_v21, %s4504_s24  ;;  %v3849_v22 = vmul.f32 -1.442695, %v1923_v21 }
 0xb52   : > { %4431 = vpow2.f32 %v3849_v22 }
 0xb53   : > { %4433 = vpow2.f32 %v3850_v31 }
 0xb5f   : > { %v4432_v32 = vpop.eup %4431 }
 0xb60   : > { %v4434_v23 = vpop.eup %4433  ;;  %v1938_v24 = vadd.f32 1.0, %v4432_v32 }
 0xb61   : > { %v1939_v25 = vadd.f32 1.0, %v4434_v23 }
 0xb62   : > { %4435 = vrcp.f32 %v1938_v24 }
 0xb63   : > { %4437 = vrcp.f32 %v1939_v25 }
 0xb6f   : > { %v4436_v26 = vpop.eup %4435 }
 0xb70   : > { %v4438_v27 = vpop.eup %4437  ;;  %v1944_v35 = vmul.f32 %v4436_v26, %v1923_v21 }
 0xb71   : > { %v1945_v38 = vmul.f32 %v4438_v27, %v4205_v20 }
 0xbc0   : > { %v1951_v28 = vpop.permute.xlu1 %1950 }
 0xbc1   : > { %v1955_v42 = vmul.f32 %v1951_v28, %v1945_v38 }
 0xbc2   : > { %v1949_v39 = vpop.permute.xlu0 %1948 }
 0xbc3   : > { %v1954_v40 = vmul.f32 %v1949_v39, %v1944_v35 }
 0xbc5   : > { %4222 = vmatprep.mubr.msk.f32.mxu1 %vm592_vm2, %v1954_v40 }
 0xbc6   : > { %4223 = vmatmul.mubr.msk.f32.vlgmr.msra.gmra.mxu1 %vm592_vm2, %v1955_v42 }
 0xc86   : > { %v4224_v43 = vpop.f32.mrf.mxu1 }
 0xc87   : > { %v4933_v47 = vadd.f32 %v4224_v43, %v4874_v48  ;;  %v3858_v48 = vld [vmem:[%s5230_s6 + $0x38] sm:$0xff] }
 0xc88   : > { %v2036_v49 = vpop.f32.mrf.mxu1  ;;  %4225 = vmatprep.subr.mxu0 %v3858_v48 }
 0xc89   : > { %v4936_v17 = vadd.f32 %v2036_v49, %v4877_v41  ;;  %v2050_v18 = vmul.f32 %v4933_v47, %v4933_v47  ;;  %v3857_v41 = vld [vmem:[%s5230_s6 + $0x30] sm:$0xff]  ;;  %4226 = vmatpush3.msra.mxu0 %v3858_v48 }
 0xc8a   : > { %4227 = vmatprep.subr.mxu0 %v3857_v41 }
 0xc8b   : > { %v2054_v50 = vsel %vm484_vm1, %v2050_v18, 0.0  ;;  %v2049_v51 = vmul.f32 %v4936_v17, %v4936_v17  ;;  %4228 = vmatpush3.msra.mxu0 %v3857_v41 }
 0xc8c   : > { %2055 = vadd.xlane.f32.xlu0 %v2054_v50  ;;  %4229 = vmatprep.subr.mxu0 %v3856_v0 }
 0xc8d   : > { %v2051_v2 = vsel %vm480_vm0, %v2049_v51, 0.0  ;;  %4230 = vmatpush3.msra.mxu0 %v3856_v0 }
 0xc8e   : > { %2052 = vadd.xlane.f32.xlu1 %v2051_v2  ;;  %4231 = vmatprep.subr.mxu0 %v3855_v44  ;;  %v3863_v2 = vld [vmem:[%s5231_s7 + $0x20] sm:$0xff] }
 0xc8f   : > { %4232 = vmatpush3.msra.mxu0 %v3855_v44 }
 0xc90   : > { %4236 = vmatprep.subr.mxu0 %v4621_v10 }
 0xd15   : > { %v2056_v45 = vpop.xlane.xlu0 %2055 }
 0xd16   : > { %v2058_v46 = vmul.f32 0.03125, %v2056_v45 }
 0xd17   : > { %v2053_v52 = vpop.xlane.xlu1 %2052 }
 0xd18   : > { %v2060_v55 = vadd.f32 1e-05, %v2058_v46  ;;  %v2057_v56 = vmul.f32 0.03125, %v2053_v52 }
 0xd1a   : > { %4439 = vrsqrt.f32 %v2060_v55  ;;  %v2059_v57 = vadd.f32 1e-05, %v2057_v56 }
 0xd1c   : > { %4441 = vrsqrt.f32 %v2059_v57 }
 0xd27   : > { %v4440_v58 = vpop.eup %4439 }
 0xd28   : > { %v2064_v60 = vmul.f32 %v4440_v58, %v4933_v47 }
 0xd29   : > { %v4442_v59 = vpop.eup %4441 }
 0xd2a   : > { %v2063_v62 = vmul.f32 %v4442_v59, %v4936_v17  ;;  %v2072_v1 = vmul.f32 %v3854_v61, %v2064_v60 }
 0xd2c   : > { %v2071_v63 = vmul.f32 %v3854_v61, %v2063_v62 }
 0xd2e   : > { %4233 = vmatprep.mubr.msk.f32.mxu0 %vm480_vm0, %v2071_v63 }
 0xd2f   : > { %4234 = vmatmul.mubr.msk.f32.vlgmr.msra.gmra.mxu0 %vm480_vm0, %v2072_v1 }
 0xd30   : > { %4237 = vmatpush3.msra.mxu0 %v4621_v10 }
 0xd31   : > { %4238 = vmatprep.subr.mxu0 %v4626_v11 }
 0xd32   : > { %4239 = vmatpush3.msra.mxu0 %v4626_v11 }
 0xd33   : > { %4240 = vmatprep.subr.mxu0 %v4633_v12 }
 0xd34   : > { %4241 = vmatpush3.msra.mxu0 %v4633_v12 }
 0xd35   : > { %4242 = vmatprep.subr.mxu0 %v4640_v13 }
 0xd36   : > { %4243 = vmatpush3.msra.mxu0 %v4640_v13 }
 0xd37   : > { %4244 = vmatprep.subr.mxu0 %v4647_v14 }
 0xd38   : > { %4245 = vmatpush3.msra.mxu0 %v4647_v14 }
 0xd39   : > { %4246 = vmatprep.subr.mxu0 %v4654_v15 }
 0xd3a   : > { %4247 = vmatpush3.msra.mxu0 %v4654_v15 }
 0xd3b   : > { %4248 = vmatprep.subr.mxu0 %v4670_v29 }
 0xd3c   : > { %4249 = vmatpush3.msra.mxu0 %v4670_v29 }
 0xd3d   : > { %4250 = vmatprep.subr.mxu0 %v4677_v30 }
 0xd3e   : > { %4251 = vmatpush3.msra.mxu0 %v4677_v30 }
 0xdef   : > { %v4979_v10 = vpop.f32.mrf.mxu0 }
 0xdf0   : > { %v2160_v13 = vmul.f32 %v4979_v10, %v4692_v33 }
 0xdf1   : > { %v4981_v11 = vpop.f32.mrf.mxu0 }
 0xdf2   : > { %4252 = vmatprep.mubr.msk.f32.mxu0 %vm592_vm2, %v4981_v11  ;;  %v2159_v30 = vmul.f32 %v4981_v11, %v4702_v36 }
 0xdf3   : > { %4253 = vmatmul.mubr.msk.f32.vlgmr.msra.gmra.mxu0 %vm592_vm2, %v4979_v10 }
 0xeb3   : > { %v4254_v12 = vpop.f32.mrf.mxu0 }
 0xeb4   : > { %v2243_v14 = vmul.f32 %v4254_v12, %v4697_v34 }
 0xeb5   : > { %v2233_v15 = vpop.f32.mrf.mxu0 }
 0xeb6   : > { %v4990_v29 = vadd.f32 %v2243_v14, %v2160_v13  ;;  %v2242_v3 = vmul.f32 %v2233_v15, %v4707_v37  ;;  %v3864_v15 = vld [vmem:[%s5231_s7 + $0x28] sm:$0xff] }
 0xeb8   : > { %v4995_v4 = vadd.f32 %v2242_v3, %v2159_v30  ;;  %2257 = vrot.lane.b32.xlu0 %v4990_v29, %s4502_s19  ;;  %v5011_v37 = vmul.f32 0.35355338, %v4990_v29 }
 0xeba   : > { %2255 = vrot.lane.b32.xlu1 %v4995_v4, %s4502_s19  ;;  %v5002_v33 = vmul.f32 0.35355338, %v4995_v4 }
 0xebc   : > { %4259 = vmatprep.mubr.msk.f32.mxu1 %vm690_vm3, %v5002_v33 }
 0xf2a   : > { %v2258_v34 = vpop.permute.xlu0 %2257 }
 0xf2b   : > { %4255 = vmatprep.subr.msk.mxu1 %vm690_vm3, %v2258_v34 }
 0xf2c   : > { %4256 = vmatpush3.xpose.msk.msra.mxu1 %vm690_vm3, %v2258_v34  ;;  %v2256_v36 = vpop.permute.xlu1 %2255 }
 0xf2d   : > { %4257 = vmatprep.subr.msk.mxu1 %vm690_vm3, %v2256_v36 }
 0xf30   : > { %4258 = vmatpush3.xpose.msk.msra.mxu1 %vm690_vm3, %v2256_v36 }
 0xf33   : > { %4260 = vmatmul.mubr.msk.f32.vlgmr.msra.gmra.mxu1 %vm690_vm3, %v5011_v37 }
 0xff3   : > { %v4261_v5 = vpop.f32.mrf.mxu1 }
 0xff4   : > { %v2341_v6 = vadd.f32 %v4261_v5, %v4758_v53 }
 0xff5   : > { %v2335_v7 = vpop.f32.mrf.mxu1 }
 0xff6   : > { %v2336_v8 = vadd.f32 %v2335_v7, %v4761_v54  ;;  %v2347_v9 = vsel %vm780_vm4, %v2341_v6, -inf }
 0xff7   : > { %2348 = vmax.xlane.f32.xlu0 %v2347_v9 }
 0xff8   : > { %v2344_v16 = vsel %vm776_vm5, %v2336_v8, -inf }
 0xff9   : > { %2345 = vmax.xlane.f32.xlu1 %v2344_v16 }
0x1080   : > { %v2349_v19 = vpop.xlane.xlu0 %2348 }
0x1081   : > { %v2351_v20 = vsub.f32 %v2341_v6, %v2349_v19 }
0x1082   : > { %v2346_v21 = vpop.xlane.xlu1 %2345 }
0x1083   : > { %v2354_v22 = vmul.f32 1.442695, %v2351_v20  ;;  %v2350_v31 = vsub.f32 %v2336_v8, %v2346_v21 }
0x1085   : > { %4443 = vpow2.f32 %v2354_v22  ;;  %v2352_v32 = vmul.f32 1.442695, %v2350_v31  ;;  %v4491_v22 = vld [vmem:[%s4755_s23 + $0x8] sm:$0xf] }
0x1087   : > { %4445 = vpow2.f32 %v2352_v32 }
0x1092   : > { %v4444_v23 = vpop.eup %4443 }
0x1093   : > { %v2359_v24 = vsel %vm780_vm4, %v4444_v23, 0.0 }
0x1094   : > { %v4446_v25 = vpop.eup %4445  ;;  %2360 = vadd.xlane.f32.xlu1 %v2359_v24 }
0x1095   : > { %v2356_v26 = vsel %vm776_vm5, %v4446_v25, 0.0 }
0x1096   : > { %2357 = vadd.xlane.f32.xlu0 %v2356_v26 }
0x10a5   : > { %2366 = vrot.lane.b32.xlu1 %v4981_v11, %s4504_s24 }
0x10a9   : > { %2460 = vrot.lane.b32.xlu1 %v4990_v29, %s4501_s18 }
0x10ac   : > { %2368 = vrot.lane.b32.xlu0 %v4979_v10, %s4504_s24 }
0x10ad   : > { %2454 = vrot.lane.b32.xlu1 %v5002_v33, %s4503_s20 }
0x10b0   : > { %2458 = vrot.lane.b32.xlu0 %v4995_v4, %s4501_s18 }
0x10b4   : > { %2456 = vrot.lane.b32.xlu0 %v5011_v37, %s4503_s20  ;;  %s5248_s20 = smov 112  }
0x111d   : > { %v2361_v27 = vpop.xlane.xlu1 %2360 }
0x111e   : > { %4447 = vrcp.f32 %v2361_v27 }
0x111f   : > { %v2358_v28 = vpop.xlane.xlu0 %2357 }
0x1120   : > { %4449 = vrcp.f32 %v2358_v28 }
0x1121   : > { %v2367_v35 = vpop.permute.xlu1 %2366 }
0x1123   : > { %v2369_v38 = vpop.permute.xlu0 %2368 }
0x1124   : > { %4262 = vmatprep.subr.msk.mxu1 %vm811_vm6, %v2369_v38 }
0x1125   : > { %4263 = vmatpush3.msk.msra.mxu1 %vm811_vm6, %v2369_v38  ;;  %v2461_v39 = vpop.permute.xlu1 %2460 }
0x1126   : > { %4264 = vmatprep.subr.mxu1 %v2367_v35 }
0x1127   : > { %4265 = vmatpush3.msra.mxu1 %v2367_v35  ;;  %v2459_v50 = vpop.permute.xlu0 %2458 }
0x1128   : > { %4269 = vmatprep.subr.msk.mxu1 %vm690_vm3, %v2461_v39 }
0x1129   : > { %v2455_v18 = vpop.permute.xlu1 %2454 }
0x112b   : > { %v4448_v40 = vpop.eup %4447  ;;  %v2457_v51 = vpop.permute.xlu0 %2456 }
0x112c   : > { %v2365_v49 = vmul.f32 %v4448_v40, %v4444_v23  ;;  %v4492_v23 = vld [vmem:[%s4755_s23] sm:$0xff]  ;;  %s5251_s23 = smov 48  }
0x112d   : > { %v4450_v42 = vpop.eup %4449 }
0x112e   : > { %v2364_v43 = vmul.f32 %v4450_v42, %v4446_v25 }
0x1130   : > { %4266 = vmatprep.mubr.msk.f32.mxu1 %vm776_vm5, %v2364_v43 }
0x1131   : > { %4267 = vmatmul.mubr.msk.f32.vlgmr.msra.gmra.mxu1 %vm776_vm5, %v2365_v49 }
0x1132   : > { %4270 = vmatpush3.xpose.msk.msra.mxu1 %vm690_vm3, %v2461_v39  ;;  %4273 = vmatprep.mubr.msk.f32.mxu1 %vm690_vm3, %v2455_v18 }
0x1133   : > { %4271 = vmatprep.subr.msk.mxu1 %vm690_vm3, %v2459_v50 }
0x1136   : > { %4272 = vmatpush3.xpose.msk.msra.mxu1 %vm690_vm3, %v2459_v50 }
0x1137   : > { %4288 = vmatprep.subr.mxu1 %v3863_v2 }
0x1139   : > { %4274 = vmatmul.mubr.msk.f32.vlgmr.msra.gmra.mxu1 %vm690_vm3, %v2457_v51 }
0x113a   : > { %4289 = vmatpush3.msra.mxu1 %v3863_v2 }
0x11f1   : > { %v4268_v48 = vpop.f32.mrf.mxu1 }
0x11f3   : > { %v2445_v41 = vpop.f32.mrf.mxu1 }
0x11f4   : > { %4290 = vmatprep.mubr.msk.f32.mxu1 %vm690_vm3, %v2445_v41 }
0x11f5   : > { %4291 = vmatmul.mubr.msk.f32.vlgmr.msra.gmra.mxu1 %vm690_vm3, %v4268_v48 }
0x11f9   : > { %v4275_v0 = vpop.f32.mrf.mxu1 }
0x11fa   : > { %v2542_v44 = vadd.f32 %v4275_v0, %v4758_v53 }
0x11fb   : > { %v2536_v45 = vpop.f32.mrf.mxu1 }
0x11fc   : > { %v2537_v46 = vadd.f32 %v2536_v45, %v4761_v54  ;;  %v2548_v52 = vsel %vm780_vm4, %v2542_v44, -inf }
0x11fd   : > { %2549 = vmax.xlane.f32.xlu0 %v2548_v52 }
0x11fe   : > { %v2545_v55 = vsel %vm776_vm5, %v2537_v46, -inf }
0x11ff   : > { %2546 = vmax.xlane.f32.xlu1 %v2545_v55 }
0x1286   : > { %v2550_v56 = vpop.xlane.xlu0 %2549 }
0x1287   : > { %v2552_v57 = vsub.f32 %v2542_v44, %v2550_v56 }
0x1288   : > { %v2547_v58 = vpop.xlane.xlu1 %2546 }
0x1289   : > { %v2555_v59 = vmul.f32 1.442695, %v2552_v57  ;;  %v2551_v60 = vsub.f32 %v2537_v46, %v2547_v58 }
0x128b   : > { %4451 = vpow2.f32 %v2555_v59  ;;  %v2553_v61 = vmul.f32 1.442695, %v2551_v60 }
0x128d   : > { %4453 = vpow2.f32 %v2553_v61 }
0x1298   : > { %v4452_v62 = vpop.eup %4451 }
0x1299   : > { %v2560_v53 = vsel %vm780_vm4, %v4452_v62, 0.0 }
0x129a   : > { %v4454_v63 = vpop.eup %4453  ;;  %2561 = vadd.xlane.f32.xlu1 %v2560_v53 }
0x129b   : > { %v2557_v54 = vsel %vm776_vm5, %v4454_v63, 0.0 }
0x129c   : > { %2558 = vadd.xlane.f32.xlu0 %v2557_v54 }
0x12ab   : > { %2567 = vrot.lane.b32.xlu1 %v4981_v11, %s4505_s26 }
0x12af   : > { %2823 = vrot.lane.b32.xlu1 %v4990_v29, %s4506_s28 }
0x12b2   : > { %2569 = vrot.lane.b32.xlu0 %v4979_v10, %s4505_s26 }
0x12b3   : > { %2817 = vrot.lane.b32.xlu1 %v5002_v33, %s5248_s20 }
0x12b6   : > { %2821 = vrot.lane.b32.xlu0 %v4995_v4, %s4506_s28 }
0x12b7   : > { %3107 = vrot.lane.b32.xlu1 %v4990_v29, %s5249_s17 }
0x12ba   : > { %2819 = vrot.lane.b32.xlu0 %v5011_v37, %s5248_s20 }
0x12bb   : > { %3101 = vrot.lane.b32.xlu1 %v5002_v33, %s5250_s16 }
0x12be   : > { %3105 = vrot.lane.b32.xlu0 %v4995_v4, %s5249_s17 }
0x12c2   : > { %3103 = vrot.lane.b32.xlu0 %v5011_v37, %s5250_s16 }
0x1323   : > { %v2562_v1 = vpop.xlane.xlu1 %2561 }
0x1324   : > { %4455 = vrcp.f32 %v2562_v1 }
0x1325   : > { %v2559_v12 = vpop.xlane.xlu0 %2558 }
0x1326   : > { %4457 = vrcp.f32 %v2559_v12 }
0x1327   : > { %v2568_v14 = vpop.permute.xlu1 %2567 }
0x1329   : > { %v2570_v13 = vpop.permute.xlu0 %2569 }
0x132a   : > { %4276 = vmatprep.subr.msk.mxu0 %vm811_vm6, %v2570_v13 }
0x132b   : > { %4277 = vmatpush3.msk.msra.mxu0 %vm811_vm6, %v2570_v13  ;;  %v2824_v33 = vpop.permute.xlu1 %2823 }
0x132c   : > { %4278 = vmatprep.subr.mxu0 %v2568_v14 }
0x132d   : > { %4279 = vmatpush3.msra.mxu0 %v2568_v14  ;;  %v2822_v37 = vpop.permute.xlu0 %2821  ;;  %v3865_v14 = vld [vmem:[%s5231_s7 + $0x30] sm:$0xff] }
0x132e   : > { %4283 = vmatprep.subr.mxu0 %v3864_v15 }
0x132f   : > { %v2818_v34 = vpop.permute.xlu1 %2817 }
0x1331   : > { %v4456_v29 = vpop.eup %4455  ;;  %v2820_v7 = vpop.permute.xlu0 %2819 }
0x1332   : > { %v2566_v4 = vmul.f32 %v4456_v29, %v4452_v62 }
0x1333   : > { %v4458_v30 = vpop.eup %4457  ;;  %v3108_v6 = vpop.permute.xlu1 %3107 }
0x1334   : > { %v2565_v3 = vmul.f32 %v4458_v30, %v4454_v63 }
0x1335   : > { %v3106_v9 = vpop.permute.xlu0 %3105 }
0x1336   : > { %4280 = vmatprep.mubr.msk.f32.mxu0 %vm776_vm5, %v2565_v3 }
0x1337   : > { %4281 = vmatmul.mubr.msk.f32.vlgmr.msra.gmra.mxu0 %vm776_vm5, %v2566_v4  ;;  %v3102_v8 = vpop.permute.xlu1 %3101 }
0x1338   : > { %4284 = vmatpush3.msra.mxu0 %v3864_v15  ;;  %v4292_v15 = vpop.f32.mrf.mxu1 }
0x1339   : > { %4293 = vmatprep.subr.msk.mxu0 %vm690_vm3, %v2824_v33  ;;  %v3104_v16 = vpop.permute.xlu0 %3103 }
0x133a   : > { %v2808_v29 = vpop.f32.mrf.mxu1 }
0x13f7   : > { %v4282_v36 = vpop.f32.mrf.mxu0 }
0x13f9   : > { %v2646_v5 = vpop.f32.mrf.mxu0 }
0x13fa   : > { %4285 = vmatprep.mubr.msk.f32.mxu0 %vm690_vm3, %v2646_v5 }
0x13fb   : > { %4286 = vmatmul.mubr.msk.f32.vlgmr.msra.gmra.mxu0 %vm690_vm3, %v4282_v36 }
0x13fc   : > { %4294 = vmatpush3.xpose.msk.msra.mxu0 %vm690_vm3, %v2824_v33  ;;  %4297 = vmatprep.mubr.msk.f32.mxu0 %vm690_vm3, %v2818_v34 }
0x13fd   : > { %4295 = vmatprep.subr.msk.mxu0 %vm690_vm3, %v2822_v37 }
0x1400   : > { %4296 = vmatpush3.xpose.msk.msra.mxu0 %vm690_vm3, %v2822_v37 }
0x1401   : > { %4312 = vmatprep.subr.msk.mxu0 %vm690_vm3, %v3108_v6 }
0x1403   : > { %4298 = vmatmul.mubr.msk.f32.vlgmr.msra.gmra.mxu0 %vm690_vm3, %v2820_v7 }
0x1404   : > { %4313 = vmatpush3.xpose.msk.msra.mxu0 %vm690_vm3, %v3108_v6  ;;  %4316 = vmatprep.mubr.msk.f32.mxu0 %vm690_vm3, %v3102_v8  ;;  %v3866_v6 = vld [vmem:[%s5231_s7 + $0x38] sm:$0xff] }
0x1405   : > { %4314 = vmatprep.subr.msk.mxu0 %vm690_vm3, %v3106_v9 }
0x1408   : > { %4315 = vmatpush3.xpose.msk.msra.mxu0 %vm690_vm3, %v3106_v9 }
0x140b   : > { %4317 = vmatmul.mubr.msk.f32.vlgmr.msra.gmra.mxu0 %vm690_vm3, %v3104_v16 }
0x14bb   : > { %v5095_v19 = vpop.f32.mrf.mxu0 }
0x14bc   : > { %v2814_v7 = vadd.f32 %v4292_v15, %v5095_v19 }
0x14bd   : > { %v5097_v20 = vpop.f32.mrf.mxu0 }
0x14be   : > { %v2809_v9 = vadd.f32 %v2808_v29, %v5097_v20 }
0x14c3   : > { %v4299_v21 = vpop.f32.mrf.mxu0 }
0x14c4   : > { %v2905_v31 = vadd.f32 %v4491_v22, %v4299_v21 }
0x14c5   : > { %v2899_v32 = vpop.f32.mrf.mxu0 }
0x14c6   : > { %v2900_v24 = vadd.f32 %v4492_v23, %v2899_v32  ;;  %v2911_v25 = vsel %vm780_vm4, %v2905_v31, -inf }
0x14c7   : > { %2912 = vmax.xlane.f32.xlu0 %v2911_v25 }
0x14c8   : > { %v2908_v26 = vsel %vm776_vm5, %v2900_v24, -inf }
0x14c9   : > { %2909 = vmax.xlane.f32.xlu1 %v2908_v26 }
0x14cb   : > { %v4318_v50 = vpop.f32.mrf.mxu0 }
0x14cc   : > { %v3189_v48 = vadd.f32 %v4491_v22, %v4318_v50 }
0x14cd   : > { %v3183_v51 = vpop.f32.mrf.mxu0 }
0x14ce   : > { %v3184_v2 = vadd.f32 %v4492_v23, %v3183_v51  ;;  %v3195_v0 = vsel %vm780_vm4, %v3189_v48, -inf }
0x14d0   : > { %v3192_v41 = vsel %vm776_vm5, %v3184_v2, -inf }
0x1550   : > { %v2913_v27 = vpop.xlane.xlu0 %2912 }
0x1551   : > { %v2915_v28 = vsub.f32 %v2905_v31, %v2913_v27 }
0x1552   : > { %v2910_v35 = vpop.xlane.xlu1 %2909 }
0x1553   : > { %v2918_v38 = vmul.f32 1.442695, %v2915_v28  ;;  %v2914_v39 = vsub.f32 %v2900_v24, %v2910_v35 }
0x1555   : > { %4459 = vpow2.f32 %v2918_v38  ;;  %v2916_v40 = vmul.f32 1.442695, %v2914_v39  ;;  %v3906_v39 = vld [vmem:[%s5233_s9 + $0x28] sm:$0xff] }
0x1557   : > { %4461 = vpow2.f32 %v2916_v40  ;;  %v3905_v40 = vld [vmem:[%s5233_s9 + $0x20] sm:$0xff] }
0x1562   : > { %v4460_v42 = vpop.eup %4459 }
0x1563   : > { %v2923_v43 = vsel %vm780_vm4, %v4460_v42, 0.0 }
0x1564   : > { %v4462_v49 = vpop.eup %4461  ;;  %2924 = vadd.xlane.f32.xlu1 %v2923_v43 }
0x1565   : > { %v2920_v18 = vsel %vm776_vm5, %v4462_v49, 0.0 }
0x1566   : > { %2921 = vadd.xlane.f32.xlu0 %v2920_v18 }
0x1575   : > { %2930 = vrot.lane.b32.xlu1 %v4981_v11, %s5251_s23 }
0x157c   : > { %2932 = vrot.lane.b32.xlu0 %v4979_v10, %s5251_s23 }
0x1599   : > { %3193 = vmax.xlane.f32.xlu1 %v3192_v41 }
0x159b   : > { %3196 = vmax.xlane.f32.xlu0 %v3195_v0  ;;  %v3904_v0 = vld [vmem:[%s5232_s8 + $0x1] ss:$0 sm:$0xff] }
0x15ed   : > { %v2925_v44 = vpop.xlane.xlu1 %2924 }
0x15ee   : > { %4463 = vrcp.f32 %v2925_v44 }
0x15ef   : > { %v2922_v45 = vpop.xlane.xlu0 %2921 }
0x15f0   : > { %4465 = vrcp.f32 %v2922_v45 }
0x15f1   : > { %v2931_v52 = vpop.permute.xlu1 %2930 }
0x15f3   : > { %v2933_v46 = vpop.permute.xlu0 %2932 }
0x15f4   : > { %4300 = vmatprep.subr.msk.mxu1 %vm811_vm6, %v2933_v46 }
0x15f5   : > { %4301 = vmatpush3.msk.msra.mxu1 %vm811_vm6, %v2933_v46 }
0x15f6   : > { %4302 = vmatprep.subr.mxu1 %v2931_v52 }
0x15f7   : > { %4303 = vmatpush3.msra.mxu1 %v2931_v52  ;;  %v3920_v52 = vld [vmem:[%s5234_s10 + $0x78] sm:$0xff] }
0x15f8   : > { %4307 = vmatprep.subr.mxu1 %v3865_v14 }
0x15fb   : > { %v4464_v55 = vpop.eup %4463 }
0x15fc   : > { %v2929_v58 = vmul.f32 %v4464_v55, %v4460_v42  ;;  %v3919_v55 = vld [vmem:[%s5234_s10 + $0x70] sm:$0xff] }
0x15fd   : > { %v4466_v56 = vpop.eup %4465 }
0x15fe   : > { %v2928_v57 = vmul.f32 %v4466_v56, %v4462_v49  ;;  %v3918_v56 = vld [vmem:[%s5234_s10 + $0x68] sm:$0xff] }
0x1600   : > { %4304 = vmatprep.mubr.msk.f32.mxu1 %vm776_vm5, %v2928_v57  ;;  %v3917_v57 = vld [vmem:[%s5234_s10 + $0x60] sm:$0xff] }
0x1601   : > { %4305 = vmatmul.mubr.msk.f32.vlgmr.msra.gmra.mxu1 %vm776_vm5, %v2929_v58  ;;  %v3916_v58 = vld [vmem:[%s5234_s10 + $0x58] sm:$0xff] }
0x1602   : > { %4308 = vmatpush3.msra.mxu1 %v3865_v14 }
0x1622   : > { %v3194_v59 = vpop.xlane.xlu1 %3193 }
0x1623   : > { %v3198_v60 = vsub.f32 %v3184_v2, %v3194_v59  ;;  %v3915_v59 = vld [vmem:[%s5234_s10 + $0x50] sm:$0xff] }
0x1624   : > { %v3197_v61 = vpop.xlane.xlu0 %3196 }
0x1625   : > { %v3200_v62 = vmul.f32 1.442695, %v3198_v60  ;;  %v3199_v53 = vsub.f32 %v3189_v48, %v3197_v61  ;;  %v3914_v60 = vld [vmem:[%s5234_s10 + $0x48] sm:$0xff]  ;;  %v3913_v61 = vld [vmem:[%s5234_s10 + $0x40] sm:$0xff] }
0x1627   : > { %4467 = vpow2.f32 %v3200_v62  ;;  %v3202_v63 = vmul.f32 1.442695, %v3199_v53 }
0x1629   : > { %4469 = vpow2.f32 %v3202_v63 }
0x1634   : > { %v4468_v54 = vpop.eup %4467 }
0x1635   : > { %v3204_v1 = vsel %vm776_vm5, %v4468_v54, 0.0 }
0x1636   : > { %v4470_v12 = vpop.eup %4469  ;;  %3205 = vadd.xlane.f32.xlu0 %v3204_v1 }
0x1637   : > { %v3207_v13 = vsel %vm780_vm4, %v4470_v12, 0.0 }
0x1638   : > { %3208 = vadd.xlane.f32.xlu1 %v3207_v13 }
0x1649   : > { %3214 = vrot.lane.b32.xlu1 %v4981_v11, %s5252_s14 }
0x164c   : > { %3216 = vrot.lane.b32.xlu0 %v4979_v10, %s5252_s14 }
0x16bf   : > { %v3206_v30 = vpop.xlane.xlu0 %3205 }
0x16c0   : > { %4471 = vrcp.f32 %v3206_v30 }
0x16c1   : > { %v4306_v3 = vpop.f32.mrf.mxu1  ;;  %v3209_v4 = vpop.xlane.xlu1 %3208 }
0x16c2   : > { %4473 = vrcp.f32 %v3209_v4 }
0x16c3   : > { %v3009_v33 = vpop.f32.mrf.mxu1  ;;  %v3217_v34 = vpop.permute.xlu0 %3216 }
0x16c4   : > { %4309 = vmatprep.mubr.msk.f32.mxu1 %vm690_vm3, %v3009_v33  ;;  %4319 = vmatprep.subr.msk.mxu1 %vm811_vm6, %v3217_v34 }
0x16c5   : > { %4310 = vmatmul.mubr.msk.f32.vlgmr.msra.gmra.mxu1 %vm690_vm3, %v4306_v3  ;;  %v3215_v36 = vpop.permute.xlu1 %3214 }
0x16c6   : > { %4320 = vmatpush3.msk.msra.mxu1 %vm811_vm6, %v3217_v34 }
0x16c7   : > { %4321 = vmatprep.subr.mxu1 %v3215_v36 }
0x16c8   : > { %4322 = vmatpush3.msra.mxu1 %v3215_v36 }
0x16c9   : > { %4326 = vmatprep.subr.mxu1 %v3866_v6 }
0x16cd   : > { %v4472_v10 = vpop.eup %4471 }
0x16ce   : > { %v3212_v11 = vmul.f32 %v4472_v10, %v4468_v54 }
0x16cf   : > { %v4474_v37 = vpop.eup %4473 }
0x16d0   : > { %4323 = vmatprep.mubr.msk.f32.mxu1 %vm776_vm5, %v3212_v11  ;;  %v3213_v5 = vmul.f32 %v4474_v37, %v4470_v12 }
0x16d2   : > { %4324 = vmatmul.mubr.msk.f32.vlgmr.msra.gmra.mxu1 %vm776_vm5, %v3213_v5 }
0x16d3   : > { %4327 = vmatpush3.msra.mxu1 %v3866_v6 }
0x16d4   : > { %4342 = vmatprep.subr.mxu1 %v3920_v52 }
0x1785   : > { %v4311_v8 = vpop.f32.mrf.mxu1 }
0x1786   : > { %v3100_v16 = vadd.f32 %v4311_v8, %v2814_v7 }
0x1787   : > { %v3090_v21 = vpop.f32.mrf.mxu1 }
0x1788   : > { %v3099_v22 = vadd.f32 %v3090_v21, %v2809_v9  ;;  %v3642_v21 = vld [vmem:[%s5236_s12 + $0x10] sm:$0xff] }
0x1792   : > { %v4325_v31 = vpop.f32.mrf.mxu1 }
0x1794   : > { %v3293_v32 = vpop.f32.mrf.mxu1 }
0x1795   : > { %4328 = vmatprep.mubr.msk.f32.mxu1 %vm690_vm3, %v3293_v32 }
0x1796   : > { %4329 = vmatmul.mubr.msk.f32.vlgmr.msra.gmra.mxu1 %vm690_vm3, %v4325_v31  ;;  %v3640_v31 = vld [vmem:[%s5236_s12] sm:$0xff] }
0x1797   : > { %4343 = vmatpush3.msra.mxu1 %v3920_v52 }
0x1798   : > { %4344 = vmatprep.subr.mxu1 %v3919_v55 }
0x1799   : > { %4345 = vmatpush3.msra.mxu1 %v3919_v55 }
0x179a   : > { %4346 = vmatprep.subr.mxu1 %v3918_v56 }
0x179b   : > { %4347 = vmatpush3.msra.mxu1 %v3918_v56 }
0x179c   : > { %4348 = vmatprep.subr.mxu1 %v3917_v57 }
0x179d   : > { %4349 = vmatpush3.msra.mxu1 %v3917_v57 }
0x179e   : > { %4350 = vmatprep.subr.mxu1 %v3916_v58 }
0x179f   : > { %4351 = vmatpush3.msra.mxu1 %v3916_v58 }
0x17a0   : > { %4352 = vmatprep.subr.mxu1 %v3915_v59 }
0x17a1   : > { %4353 = vmatpush3.msra.mxu1 %v3915_v59 }
0x17a2   : > { %4354 = vmatprep.subr.mxu1 %v3914_v60 }
0x17a3   : > { %4355 = vmatpush3.msra.mxu1 %v3914_v60 }
0x17a4   : > { %4356 = vmatprep.subr.mxu1 %v3913_v61 }
0x17a5   : > { %4357 = vmatpush3.msra.mxu1 %v3913_v61 }
0x1856   : > { %v4330_v23 = vpop.f32.mrf.mxu1 }
0x1857   : > { %v3384_v24 = vadd.f32 %v4330_v23, %v3100_v16  ;;  %v3643_v16 = vld [vmem:[%s5236_s12 + $0x18] sm:$0xff] }
0x1858   : > { %v3374_v25 = vpop.f32.mrf.mxu1 }
0x1859   : > { %v5138_v26 = vadd.f32 %v3384_v24, %v4933_v47  ;;  %v3383_v27 = vadd.f32 %v3374_v25, %v3099_v22  ;;  %v3908_v47 = vld [vmem:[%s5233_s9 + $0x38] sm:$0xff]  ;;  %v3641_v22 = vld [vmem:[%s5236_s12 + $0x8] sm:$0xff] }
0x185a   : > { %4331 = vmatprep.subr.mxu0 %v3908_v47 }
0x185b   : > { %v5141_v19 = vadd.f32 %v3383_v27, %v4936_v17  ;;  %v3390_v20 = vmul.f32 %v5138_v26, %v5138_v26  ;;  %v3907_v17 = vld [vmem:[%s5233_s9 + $0x30] sm:$0xff]  ;;  %4332 = vmatpush3.msra.mxu0 %v3908_v47 }
0x185c   : > { %4333 = vmatprep.subr.mxu0 %v3907_v17 }
0x185d   : > { %v3394_v28 = vsel %vm484_vm1, %v3390_v20, 0.0  ;;  %v3389_v35 = vmul.f32 %v5141_v19, %v5141_v19  ;;  %4334 = vmatpush3.msra.mxu0 %v3907_v17 }
0x185e   : > { %3395 = vadd.xlane.f32.xlu0 %v3394_v28  ;;  %4335 = vmatprep.subr.mxu0 %v3906_v39 }
0x185f   : > { %v3391_v38 = vsel %vm480_vm0, %v3389_v35, 0.0  ;;  %4336 = vmatpush3.msra.mxu0 %v3906_v39  ;;  %v3923_v35 = vld [vmem:[%s5235_s11] ss:$0 sm:$0xff] }
0x1860   : > { %3392 = vadd.xlane.f32.xlu1 %v3391_v38  ;;  %4337 = vmatprep.subr.mxu0 %v3905_v40 }
0x1861   : > { %4338 = vmatpush3.msra.mxu0 %v3905_v40 }
0x1862   : > { %4361 = vmatprep.subr.mxu0 %v3643_v16 }
0x18e7   : > { %v3396_v42 = vpop.xlane.xlu0 %3395 }
0x18e8   : > { %v3398_v43 = vmul.f32 0.03125, %v3396_v42 }
0x18e9   : > { %v3393_v49 = vpop.xlane.xlu1 %3392 }
0x18ea   : > { %v3400_v18 = vadd.f32 1e-05, %v3398_v43  ;;  %v3397_v50 = vmul.f32 0.03125, %v3393_v49 }
0x18ec   : > { %4475 = vrsqrt.f32 %v3400_v18  ;;  %v3399_v51 = vadd.f32 1e-05, %v3397_v50 }
0x18ee   : > { %4477 = vrsqrt.f32 %v3399_v51 }
0x18f9   : > { %v4476_v2 = vpop.eup %4475 }
0x18fa   : > { %v3404_v41 = vmul.f32 %v4476_v2, %v5138_v26 }
0x18fb   : > { %v4478_v48 = vpop.eup %4477 }
0x18fc   : > { %v3403_v44 = vmul.f32 %v4478_v48, %v5141_v19  ;;  %v3412_v46 = vmul.f32 %v3904_v0, %v3404_v41 }
0x18fe   : > { %v3411_v45 = vmul.f32 %v3904_v0, %v3403_v44 }
0x1900   : > { %4339 = vmatprep.mubr.msk.f32.mxu0 %vm480_vm0, %v3411_v45 }
0x1901   : > { %4340 = vmatmul.mubr.msk.f32.vlgmr.msra.gmra.mxu0 %vm480_vm0, %v3412_v46 }
0x1902   : > { %4362 = vmatpush3.msra.mxu0 %v3643_v16 }
0x1903   : > { %4363 = vmatprep.subr.mxu0 %v3642_v21 }
0x1904   : > { %4364 = vmatpush3.msra.mxu0 %v3642_v21 }
0x1905   : > { %4365 = vmatprep.subr.mxu0 %v3641_v22 }
0x1906   : > { %4366 = vmatpush3.msra.mxu0 %v3641_v22 }
0x1907   : > { %4367 = vmatprep.subr.mxu0 %v3640_v31 }
0x1908   : > { %4368 = vmatpush3.msra.mxu0 %v3640_v31 }
0x19c1   : > { %v4341_v62 = vpop.f32.mrf.mxu0 }
0x19c2   : > { %3517 = vrot.lane.b32.xlu1 %v4341_v62, %s4504_s24  ;;  %v3912_v54 = vmul.f32 -1.442695, %v4341_v62 }
0x19c3   : > { %v3490_v53 = vpop.f32.mrf.mxu0 }
0x19c4   : > { %3515 = vrot.lane.b32.xlu0 %v3490_v53, %s4504_s24  ;;  %v3911_v63 = vmul.f32 -1.442695, %v3490_v53 }
0x19c6   : > { %4479 = vpow2.f32 %v3911_v63 }
0x19c7   : > { %4481 = vpow2.f32 %v3912_v54 }
0x19d3   : > { %v4480_v1 = vpop.eup %4479 }
0x19d4   : > { %v4482_v12 = vpop.eup %4481  ;;  %v3505_v13 = vadd.f32 1.0, %v4480_v1 }
0x19d5   : > { %v3506_v14 = vadd.f32 1.0, %v4482_v12 }
0x19d6   : > { %4483 = vrcp.f32 %v3505_v13 }
0x19d7   : > { %4485 = vrcp.f32 %v3506_v14 }
0x19e3   : > { %v4484_v15 = vpop.eup %4483 }
0x19e4   : > { %v4486_v29 = vpop.eup %4485  ;;  %v3511_v3 = vmul.f32 %v4484_v15, %v3490_v53 }
0x19e5   : > { %v3512_v4 = vmul.f32 %v4486_v29, %v4341_v62 }
0x1a34   : > { %v3518_v30 = vpop.permute.xlu1 %3517 }
0x1a35   : > { %v3522_v36 = vmul.f32 %v3518_v30, %v3512_v4 }
0x1a36   : > { %v3516_v33 = vpop.permute.xlu0 %3515 }
0x1a37   : > { %v3521_v34 = vmul.f32 %v3516_v33, %v3511_v3 }
0x1a39   : > { %4358 = vmatprep.mubr.msk.f32.mxu1 %vm592_vm2, %v3521_v34 }
0x1a3a   : > { %4359 = vmatmul.mubr.msk.f32.vlgmr.msra.gmra.mxu1 %vm592_vm2, %v3522_v36 }
0x1afa   : > { %v4360_v10 = vpop.f32.mrf.mxu1 }
0x1afb   : > { %v3614_v11 = vadd.f32 %v4360_v10, %v5138_v26 }
0x1afc   : > { %v3604_v37 = vpop.f32.mrf.mxu1 }
0x1afd   : > { %v3613_v5 = vadd.f32 %v3604_v37, %v5141_v19  ;;  %v3617_v6 = vmul.f32 %v3614_v11, %v3614_v11 }
0x1aff   : > { %v3621_v7 = vsel %vm484_vm1, %v3617_v6, 0.0  ;;  %v3616_v8 = vmul.f32 %v3613_v5, %v3613_v5 }
0x1b00   : > { %3622 = vadd.xlane.f32.xlu0 %v3621_v7 }
0x1b01   : > { %v3618_v9 = vsel %vm480_vm0, %v3616_v8, 0.0 }
0x1b02   : > { %3619 = vadd.xlane.f32.xlu1 %v3618_v9 }
0x1b89   : > { %v3623_v32 = vpop.xlane.xlu0 %3622 }
0x1b8a   : > { %v3625_v23 = vmul.f32 0.03125, %v3623_v32 }
0x1b8b   : > { %v3620_v24 = vpop.xlane.xlu1 %3619 }
0x1b8c   : > { %v3627_v25 = vadd.f32 1e-05, %v3625_v23  ;;  %v3624_v26 = vmul.f32 0.03125, %v3620_v24 }
0x1b8e   : > { %4487 = vrsqrt.f32 %v3627_v25  ;;  %v3626_v27 = vadd.f32 1e-05, %v3624_v26 }
0x1b90   : > { %4489 = vrsqrt.f32 %v3626_v27 }
0x1b9b   : > { %v4488_v19 = vpop.eup %4487 }
0x1b9c   : > { %v3631_v28 = vmul.f32 %v4488_v19, %v3614_v11 }
0x1b9d   : > { %v4490_v20 = vpop.eup %4489 }
0x1b9e   : > { %v3630_v38 = vmul.f32 %v4490_v20, %v3613_v5  ;;  %v3639_v17 = vmul.f32 %v3923_v35, %v3631_v28 }
0x1ba0   : > { %v3638_v47 = vmul.f32 %v3923_v35, %v3630_v38 }
0x1ba2   : > { %4369 = vmatprep.mubr.msk.f32.mxu0 %vm480_vm0, %v3638_v47 }
0x1ba3   : > { %4370 = vmatmul.mubr.msk.f32.vlgmr.msra.gmra.mxu0 %vm480_vm0, %v3639_v17 }
0x1c63   : > { %v4371_v39 = vpop.f32.mrf.mxu0 }
0x1c64   : > { %3726 = vst [vmem:[%s460_s21 + $0x8] sm:$0xf] %v4371_v39 }
0x1c65   : > { %v3716_v40 = vpop.f32.mrf.mxu0 }
0x1c66   : > { %3725 = vst [vmem:[%s460_s21] sm:$0xff] %v3716_v40 }
0x1c67 PF: > { %s23_s25 = sadd.s32 1, %s4499_s25  }
0x1c68   : > { %p20_p4 = scmp.ge.s32.totalorder %s23_s25, 4  }
0x1c6a   :  { %22 = sbr.rel (!%p20_p4) target bundleno = 1 (0x1), region = 111 }

</bundles_post_ra>
